<compile_context>
chip_gen: v7x
topology: tpu7x:2x2x1
jax: 0.10.0
libtpu: 0.0.40
codegen_flags: <defaults>
</compile_context>

<pallas_src>
import functools

import jax
import jax.numpy as jnp
from jax.experimental import pallas as pl
from jax.experimental.pallas import tpu as pltpu


LANE = 128                      # channel / label dims padded to this
SUB = 8                         # sublane granularity for halo rounding
VMEM_LIMIT = 32 * 1024 * 1024   # explicit scoped-VMEM limit (safe on v5e/v6e/v7x)


def _round_up(n, m):
    return ((n + m - 1) // m) * m


# ----------------------------------------------------------------------------
# Pallas kernels
# ----------------------------------------------------------------------------
def _temporal_block_kernel(*refs, dilation, K1, K2, C0, C1,
                           has_prev, has_ds, has_proj):
    """Fused TemporalBlock for one (batch, L-tile):
    conv1->relu, conv2->relu, residual (+1x1 downsample), add+relu, and (for
    the last block) the DCAN projection Linear + relu.

    Scratch layout (all compute dtype, persistent VMEM):
      in_buf : (C0 + tl, Cin)   raw input with C0 rows of causal context
      h1_buf : (C1 + tl, Cmid)  conv1 output with C1 rows of causal context
      col_buf: (C1 + tl, K*C)   shared im2col slab (one wide matmul per conv)
    """
    refs = list(refs)
    x_ref = refs.pop(0)
    xp_ref = refs.pop(0) if has_prev else None
    w1_ref = refs.pop(0)
    b1_ref = refs.pop(0)
    w2_ref = refs.pop(0)
    b2_ref = refs.pop(0)
    wd_ref = bd_ref = wp_ref = bp_ref = None
    if has_ds:
        wd_ref = refs.pop(0)
        bd_ref = refs.pop(0)
    if has_proj:
        wp_ref = refs.pop(0)
        bp_ref = refs.pop(0)
    o_ref, in_buf, h1_buf, col_buf = refs

    tl = x_ref.shape[1]
    Cin = in_buf.shape[1]
    Cmid = h1_buf.shape[1]
    x = x_ref[0]                                     # (tl, Cin), compute dtype

    # --- causal left context for conv1, built directly in the VMEM scratch ---
    if C0 > 0:
        if has_prev:
            l_id = pl.program_id(1)

            @pl.when(l_id == 0)
            def _():
                in_buf[pl.ds(0, C0), :] = jnp.zeros((C0, Cin), in_buf.dtype)

            @pl.when(l_id > 0)
            def _():
                in_buf[pl.ds(0, C0), :] = xp_ref[0, pl.ds(tl - C0, C0), :]
        else:
            in_buf[pl.ds(0, C0), :] = jnp.zeros((C0, Cin), in_buf.dtype)
    in_buf[pl.ds(C0, tl), :] = x

    # --- conv1: im2col -> one wide matmul (contraction K1*Cin) --------------
    # With a previous tile we also compute C1 extra leading rows of h1 so that
    # conv2 has its causal context available from genuine data.
    n1 = (C1 + tl) if has_prev else tl
    base1 = (C0 - C1) if has_prev else C0
    off1 = 0 if has_prev else C1
    for j in range(K1):                               # K1 is a small static int
        s = base1 - (K1 - 1 - j) * dilation
        col_buf[pl.ds(0, n1), pl.ds(j * Cin, Cin)] = in_buf[pl.ds(s, n1), :]
    h1 = jnp.dot(col_buf[pl.ds(0, n1), pl.ds(0, K1 * Cin)], w1_ref[...],
                 preferred_element_type=jnp.float32)
    h1 = jnp.maximum(h1 + b1_ref[...], 0.0)
    h1_buf[pl.ds(off1, n1), :] = h1.astype(h1_buf.dtype)
    if C1 > 0:
        # conv2's causal left context of h1 is zeros at the sequence start.
        if has_prev:
            @pl.when(pl.program_id(1) == 0)
            def _():
                h1_buf[pl.ds(0, C1), :] = jnp.zeros((C1, Cmid), h1_buf.dtype)
        else:
            h1_buf[pl.ds(0, C1), :] = jnp.zeros((C1, Cmid), h1_buf.dtype)

    # --- conv2: im2col -> one wide matmul (contraction K2*Cmid) -------------
    for j in range(K2):
        s = C1 - (K2 - 1 - j) * dilation
        col_buf[pl.ds(0, tl), pl.ds(j * Cmid, Cmid)] = h1_buf[pl.ds(s, tl), :]
    h2 = jnp.dot(col_buf[pl.ds(0, tl), pl.ds(0, K2 * Cmid)], w2_ref[...],
                 preferred_element_type=jnp.float32)
    h2 = jnp.maximum(h2 + b2_ref[...], 0.0)

    # --- residual (+ optional 1x1 downsample), add + relu --------------------
    if has_ds:
        res = jnp.dot(x, wd_ref[...], preferred_element_type=jnp.float32) + bd_ref[...]
    else:
        res = x.astype(jnp.float32)
    h = jnp.maximum(h2 + res, 0.0)

    # --- fused DCAN projection Linear + relu (last block only) --------------
    if has_proj:
        h = jnp.dot(h.astype(x.dtype), wp_ref[...],
                    preferred_element_type=jnp.float32) + bp_ref[...]
        h = jnp.maximum(h, 0.0)

    o_ref[0] = h.astype(o_ref.dtype)


def _output_layer_kernel(h_ref, u_ref, wf_t_ref, bf_ref, o_ref):
    """Label-wise attention + per-label final linear for one (batch, label-tile).

    Softmax normalization is deferred: attention weights stay un-normalized
    through both matmuls and a single (1, ct) approx-reciprocal scale is
    applied at the end (EUP, essentially free)."""
    h = h_ref[0]                                                      # (L, P)
    # att[t, c] = sum_p h[t, p] * U[c, p]   (u_ref stored as U^T: (P, Ct))
    att = jnp.dot(h, u_ref[...], preferred_element_type=jnp.float32)  # (L, Ct)
    att = att - jnp.max(att, axis=0, keepdims=True)                   # softmax over L
    e = jnp.exp(att)
    denom = jnp.sum(e, axis=0, keepdims=True)                         # (1, Ct)
    # m_unnorm^T[p, c] = sum_t h[t, p] * e[t, c]
    m_t = jax.lax.dot_general(
        h, e.astype(h.dtype),
        dimension_numbers=(((0,), (0,)), ((), ())),
        preferred_element_type=jnp.float32)                           # (P, Ct)
    # logits[c] = (sum_p Wf[c, p] * m_unnorm[c, p]) / denom[c] + bf[c]
    num = jnp.sum(wf_t_ref[...].astype(jnp.float32) * m_t,
                  axis=0, keepdims=True)                              # (1, Ct)
    logits = num * pl.reciprocal(denom, approx=True) + bf_ref[...]
    o_ref[0] = logits.astype(o_ref.dtype)


# ----------------------------------------------------------------------------
# Wrappers (pallas_call plumbing)
# ----------------------------------------------------------------------------
def temporal_block(x, blk, wp=None, bp=None, seq_tile=512):
    """x: (B, L, Cin).  blk weights: w1 (K1*Cin, Cmid), w2 (K2*Cmid, Cout) in the
    compute dtype (tap-stacked im2col layout), biases (1, C) f32, wd (Cin, Cout).
    If wp/bp are given, the projection Linear+relu is fused after the block."""
    B, L, Cin = x.shape
    w1, b1, w2, b2 = blk["w1"], blk["b1"], blk["w2"], blk["b2"]
    wd, bd = blk["wd"], blk["bd"]
    d = blk["dilation"]
    K1, K2 = blk["K1"], blk["K2"]
    Cmid = w1.shape[1]
    Cout = w2.shape[1]
    has_ds = wd is not None
    has_proj = wp is not None
    out_c = wp.shape[1] if has_proj else Cout

    # Causal halos: conv2 needs C1 rows of h1 context; conv1 is therefore
    # evaluated C1 rows early and needs C0 rows of raw-input context.
    C1 = _round_up((K2 - 1) * d, SUB)
    C0 = _round_up(C1 + (K1 - 1) * d, SUB)

    # Sequence tiling: largest multiple-of-8 divisor of L that is <= seq_tile
    # and >= C0 (so the halo always fits inside the previous tile).
    tl = L
    if L > seq_tile:
        for cand in range(seq_tile, max(C0, SUB) - 1, -SUB):
            if cand >= C0 and L % cand == 0:
                tl = cand
                break
    n_l = L // tl
    has_prev = n_l > 1

    ins = [x]
    in_specs = [pl.BlockSpec((1, tl, Cin), lambda b, l: (b, l, 0))]
    if has_prev:
        # Re-fetch the previous tile for the causal halo (keeps the L axis
        # fully parallel; the extra read is tiny vs. the conv compute).
        ins.append(x)
        in_specs.append(pl.BlockSpec((1, tl, Cin),
                                     lambda b, l: (b, jnp.maximum(l - 1, 0), 0)))
    ins += [w1, b1, w2, b2]
    in_specs += [
        pl.BlockSpec(w1.shape, lambda b, l: (0, 0)),
        pl.BlockSpec(b1.shape, lambda b, l: (0, 0)),
        pl.BlockSpec(w2.shape, lambda b, l: (0, 0)),
        pl.BlockSpec(b2.shape, lambda b, l: (0, 0)),
    ]
    if has_ds:
        ins += [wd, bd]
        in_specs += [pl.BlockSpec(wd.shape, lambda b, l: (0, 0)),
                     pl.BlockSpec(bd.shape, lambda b, l: (0, 0))]
    if has_proj:
        ins += [wp, bp]
        in_specs += [pl.BlockSpec(wp.shape, lambda b, l: (0, 0)),
                     pl.BlockSpec(bp.shape, lambda b, l: (0, 0))]

    cdtype = x.dtype
    col_w = max(K1 * Cin, K2 * Cmid)
    scratch = [
        pltpu.VMEM((C0 + tl, Cin), cdtype),    # causally padded conv1 input
        pltpu.VMEM((C1 + tl, Cmid), cdtype),   # h1 with conv2's causal context
        pltpu.VMEM((C1 + tl, col_w), cdtype),  # shared im2col slab
    ]

    flops = 2 * L * (K1 * Cin * Cmid + K2 * Cmid * Cout)
    if has_ds:
        flops += 2 * L * Cin * Cout
    if has_proj:
        flops += 2 * L * Cout * out_c
    flops *= B
    out_nbytes = B * L * out_c * jnp.dtype(cdtype).itemsize
    bytes_accessed = int(sum(int(a.nbytes) for a in ins) + out_nbytes)

    kernel = functools.partial(_temporal_block_kernel, dilation=d, K1=K1, K2=K2,
                               C0=C0, C1=C1, has_prev=has_prev,
                               has_ds=has_ds, has_proj=has_proj)
    return pl.pallas_call(
        kernel,
        out_shape=jax.ShapeDtypeStruct((B, L, out_c), cdtype),
        grid=(B, n_l),
        in_specs=in_specs,
        out_specs=pl.BlockSpec((1, tl, out_c), lambda b, l: (b, l, 0)),
        scratch_shapes=scratch,
        compiler_params=pltpu.CompilerParams(
            dimension_semantics=("parallel", "parallel"),
            vmem_limit_bytes=VMEM_LIMIT),
        cost_estimate=pl.CostEstimate(flops=int(flops), transcendentals=0,
                                      bytes_accessed=bytes_accessed),
    )(*ins)


def output_layer(h, u_t, wf_t, bf, num_classes, label_tile=512):
    """h: (B, L, P) compute dtype; u_t: (P, C) compute dtype; wf_t: (P, C) compute
    dtype; bf: (1, C) f32.  Tiled over the (padded) label axis so the fp32
    attention temporaries stay well inside v7x's 64 MiB VMEM."""
    B, L, P = h.shape
    C = u_t.shape[1]
    ct = min(C, label_tile)
    while C % ct:            # keep the tile a 128-multiple divisor of padded C
        ct -= LANE
    n_ct = C // ct

    flops = B * (4 * L * P * C + 2 * C * P + 3 * L * C)
    bytes_accessed = int(h.nbytes + u_t.nbytes + wf_t.nbytes + bf.nbytes + B * C * 4)

    out = pl.pallas_call(
        _output_layer_kernel,
        out_shape=jax.ShapeDtypeStruct((B, 1, C), jnp.float32),
        grid=(B, n_ct),
        in_specs=[
            pl.BlockSpec((1, L, P), lambda b, c: (b, 0, 0)),
            pl.BlockSpec((P, ct), lambda b, c: (0, c)),
            pl.BlockSpec((P, ct), lambda b, c: (0, c)),
            pl.BlockSpec((1, ct), lambda b, c: (0, c)),
        ],
        out_specs=pl.BlockSpec((1, 1, ct), lambda b, c: (b, 0, c)),
        compiler_params=pltpu.CompilerParams(
            dimension_semantics=("parallel", "parallel"),
            vmem_limit_bytes=VMEM_LIMIT),
        cost_estimate=pl.CostEstimate(flops=int(flops),
                                      transcendentals=int(B * L * C),
                                      bytes_accessed=bytes_accessed),
    )(h, u_t, wf_t, bf)
    return out[:, 0, :num_classes]


# ----------------------------------------------------------------------------
# DCAN forward (Pallas kernels for the hot path, JAX glue for gather/slice)
# ----------------------------------------------------------------------------
def dcan_forward(data, p, seq_tile=512, label_tile=512):
    # Word embedding lookup: plain-JAX gather (glue, not the hot path).
    x = jnp.take(p["emb"], data, axis=0)                      # (B, L, E_pad)
    h = x
    n_blocks = len(p["blocks"])
    for i, blk in enumerate(p["blocks"]):
        last = i == n_blocks - 1
        h = temporal_block(h, blk,
                           wp=p["wp"] if last else None,
                           bp=p["bp"] if last else None,
                           seq_tile=seq_tile)                 # (B, L, C) / (B, L, P_pad)
    return output_layer(h, p["u_t"], p["wf_t"], p["bf"], p["num_classes"],
                        label_tile=label_tile)


# ----------------------------------------------------------------------------
# Pure-JAX f32 reference (same math, for correctness check)
# ----------------------------------------------------------------------------
def ref_forward(data, params):
    def conv(inp, w, b, d, relu):
        K = w.shape[0]
        pad = (K - 1) * d
        L = inp.shape[1]
        xp = jnp.pad(inp, ((0, 0), (pad, 0), (0, 0)))
        out = sum(
            jnp.einsum("btc,cd->btd", xp[:, j * d: j * d + L, :], w[j])
            for j in range(K)
        ) + b
        return jnp.maximum(out, 0.0) if relu else out

    x = params["emb"][data]
    h = x
    for blk in params["blocks"]:
        inp = h
        h1 = conv(inp, blk["w1"], blk["b1"], blk["dilation"], True)
        h2 = conv(h1, blk["w2"], blk["b2"], blk["dilation"], True)
        res = conv(inp, blk["wd"], blk["bd"], 1, False) if blk["wd"] is not None else inp
        h = jnp.maximum(h2 + res, 0.0)
    proj = jnp.maximum(jnp.einsum("blc,cp->blp", h, params["wp"]) + params["bp"], 0.0)
    att = jnp.einsum("blp,pc->blc", proj, params["u_t"])
    alpha = jax.nn.softmax(att, axis=1)                       # softmax over L
    m = jnp.einsum("blc,blp->bcp", alpha, proj)
    return jnp.sum(params["wf"][None] * m, axis=2) + params["bf"][None]


# ----------------------------------------------------------------------------
# Deterministic parameter construction + lane padding
# ----------------------------------------------------------------------------
def xavier_uniform(key, shape, fan_in, fan_out):
    bound = (6.0 / (fan_in + fan_out)) ** 0.5
    return jax.random.uniform(key, shape, jnp.float32, -bound, bound)


def build_params(key, *, vocab, emb, conv_channel_sizes, kernel_sizes, dilations,
                 projection_size, num_classes):
    keys = iter(jax.random.split(key, 64))
    params = {"num_classes": num_classes}
    params["emb"] = 0.1 * jax.random.normal(next(keys), (vocab, emb), jnp.float32)

    blocks = []
    for chs, ks, dil in zip(conv_channel_sizes, kernel_sizes, dilations):
        c_in, c_mid, c_out = chs
        k1, k2 = ks
        d = dil[0]
        blk = {
            "dilation": d,
            "w1": xavier_uniform(next(keys), (k1, c_in, c_mid), c_in * k1, c_mid * k1),
            "b1": jnp.zeros((c_mid,), jnp.float32),
            "w2": xavier_uniform(next(keys), (k2, c_mid, c_out), c_mid * k2, c_out * k2),
            "b2": jnp.zeros((c_out,), jnp.float32),
        }
        if c_in != c_out:  # 1x1 downsample conv on the residual path
            blk["wd"] = xavier_uniform(next(keys), (1, c_in, c_out), c_in, c_out)
            blk["bd"] = jnp.zeros((c_out,), jnp.float32)
        else:
            blk["wd"] = None
            blk["bd"] = None
        blocks.append(blk)
    params["blocks"] = blocks

    c_last = conv_channel_sizes[-1][-1]
    params["wp"] = xavier_uniform(next(keys), (c_last, projection_size),
                                  c_last, projection_size)          # linear_layer.weight^T
    params["bp"] = jnp.zeros((projection_size,), jnp.float32)
    params["u_t"] = xavier_uniform(next(keys), (projection_size, num_classes),
                                   projection_size, num_classes)    # LabelWiseAttn U^T
    params["wf"] = xavier_uniform(next(keys), (num_classes, projection_size),
                                  projection_size, num_classes)     # final.weight
    params["bf"] = jnp.zeros((num_classes,), jnp.float32)
    return params


def pad_params(params, compute_dtype=jnp.bfloat16):
    """Zero-pad all channel / label dims to multiples of 128 (lane width), cast
    matmul weights + embedding table to the compute dtype, and pre-reshape conv
    weights to the tap-stacked im2col layout (K*Cin_pad, Cout_pad).  Zero padding
    is exact: padded channels stay identically zero through convs, relu,
    attention and the final linear."""
    def up(n):
        return _round_up(n, LANE)

    def pad_nd(a, target_shape, dtype):
        pads = [(0, t - s) for s, t in zip(a.shape, target_shape)]
        return jnp.pad(a, pads).astype(dtype)

    p = {"num_classes": params["num_classes"]}
    V, E = params["emb"].shape
    p["emb"] = pad_nd(params["emb"], (V, up(E)), compute_dtype)

    blocks = []
    for blk in params["blocks"]:
        K1, c_in, c_mid = blk["w1"].shape
        K2, _, c_out = blk["w2"].shape
        w1p = pad_nd(blk["w1"], (K1, up(c_in), up(c_mid)), compute_dtype)
        w2p = pad_nd(blk["w2"], (K2, up(c_mid), up(c_out)), compute_dtype)
        nb = {
            "dilation": blk["dilation"],
            "K1": K1,
            "K2": K2,
            "w1": w1p.reshape(K1 * up(c_in), up(c_mid)),     # im2col weight layout
            "b1": pad_nd(blk["b1"].reshape(1, -1), (1, up(c_mid)), jnp.float32),
            "w2": w2p.reshape(K2 * up(c_mid), up(c_out)),
            "b2": pad_nd(blk["b2"].reshape(1, -1), (1, up(c_out)), jnp.float32),
        }
        if blk["wd"] is not None:
            nb["wd"] = pad_nd(blk["wd"][0], (up(c_in), up(c_out)), compute_dtype)
            nb["bd"] = pad_nd(blk["bd"].reshape(1, -1), (1, up(c_out)), jnp.float32)
        else:
            nb["wd"] = None
            nb["bd"] = None
        blocks.append(nb)
    p["blocks"] = blocks

    c_last, proj = params["wp"].shape
    C = params["num_classes"]
    p["wp"] = pad_nd(params["wp"], (up(c_last), up(proj)), compute_dtype)
    p["bp"] = pad_nd(params["bp"].reshape(1, -1), (1, up(proj)), jnp.float32)
    p["u_t"] = pad_nd(params["u_t"], (up(proj), up(C)), compute_dtype)
    p["wf_t"] = pad_nd(params["wf"].T, (up(proj), up(C)), compute_dtype)
    p["bf"] = pad_nd(params["bf"].reshape(1, -1), (1, up(C)), jnp.float32)
    return p


if __name__ == "__main__":
    # Small, DCAN-consistent configuration.  seq_tile=32 deliberately exercises
    # the halo-tiled (multi L-tile) path at this small scale.
    B, L = 2, 64
    VOCAB, EMB = 50, 8
    CONV_CHANNEL_SIZES = [[EMB, 16, 16], [16, 16, 16]]   # two TemporalBlocks
    KERNEL_SIZES = [[3, 3], [3, 3]]
    DILATIONS = [[1, 1], [2, 2]]                          # 2^level
    PROJECTION_SIZE = 16
    NUM_CLASSES = 8
    COMPUTE_DTYPE = jnp.bfloat16   # MXU-native operands; accumulation stays fp32

    key = jax.random.PRNGKey(0)
    pkey, dkey = jax.random.split(key)
    params = build_params(
        pkey,
        vocab=VOCAB, emb=EMB,
        conv_channel_sizes=CONV_CHANNEL_SIZES,
        kernel_sizes=KERNEL_SIZES,
        dilations=DILATIONS,
        projection_size=PROJECTION_SIZE,
        num_classes=NUM_CLASSES,
    )
    data = jax.random.randint(dkey, (B, L), 0, VOCAB)

    padded = pad_params(params, compute_dtype=COMPUTE_DTYPE)
    fwd = jax.jit(lambda tokens: dcan_forward(tokens, padded,
                                              seq_tile=32, label_tile=512))

    logits = fwd(data)
    jax.block_until_ready(logits)
    assert logits.shape == (B, NUM_CLASSES), logits.shape

    expected = ref_forward(data, params)
    max_err = float(jnp.max(jnp.abs(logits - expected)))
    # bf16 matmul operands with fp32 accumulation vs. the pure-fp32 reference.
    assert jnp.allclose(logits, expected, rtol=2e-2, atol=2e-2), max_err

    print("KERNEL_OK")
</pallas_src>

<mosaic_0001>
module attributes {stable_mosaic.version = 11 : i64} {
  func.func @_temporal_block_kernel(%arg0: i32, %arg1: i32, %arg2: memref<1x32x128xbf16, #tpu.memory_space<vmem>>, %arg3: memref<1x32x128xbf16, #tpu.memory_space<vmem>>, %arg4: memref<384x128xbf16, #tpu.memory_space<vmem>>, %arg5: memref<1x128xf32, #tpu.memory_space<vmem>>, %arg6: memref<384x128xbf16, #tpu.memory_space<vmem>>, %arg7: memref<1x128xf32, #tpu.memory_space<vmem>>, %arg8: memref<128x128xbf16, #tpu.memory_space<vmem>>, %arg9: memref<1x128xf32, #tpu.memory_space<vmem>>, %arg10: memref<1x32x128xbf16, #tpu.memory_space<vmem>>, %arg11: memref<48x128xbf16, #tpu.memory_space<vmem>>, %arg12: memref<40x128xbf16, #tpu.memory_space<vmem>>, %arg13: memref<40x384xbf16, #tpu.memory_space<vmem>>) attributes {dimension_semantics = [#tpu.dimension_semantics<parallel>, #tpu.dimension_semantics<parallel>], iteration_bounds = array<i64: 2, 2>, scalar_prefetch = 0 : i64, scratch_operands = 3 : i64, tpu.core_type = #tpu.core_type<tc>, window_params = [{transform_indices = @transform_0, window_bounds = array<i64: 1, 32, 128>}, {transform_indices = @transform_1, window_bounds = array<i64: 1, 32, 128>}, {pipeline_mode = #tpu.pipeline_mode<synchronous>, transform_indices = @transform_2, window_bounds = array<i64: 384, 128>}, {pipeline_mode = #tpu.pipeline_mode<synchronous>, transform_indices = @transform_3, window_bounds = array<i64: 1, 128>}, {pipeline_mode = #tpu.pipeline_mode<synchronous>, transform_indices = @transform_4, window_bounds = array<i64: 384, 128>}, {pipeline_mode = #tpu.pipeline_mode<synchronous>, transform_indices = @transform_5, window_bounds = array<i64: 1, 128>}, {pipeline_mode = #tpu.pipeline_mode<synchronous>, transform_indices = @transform_6, window_bounds = array<i64: 128, 128>}, {pipeline_mode = #tpu.pipeline_mode<synchronous>, transform_indices = @transform_7, window_bounds = array<i64: 1, 128>}, {transform_indices = @transform_8, window_bounds = array<i64: 1, 32, 128>}]} {
    %c0 = arith.constant 0 : index
    %c0_0 = arith.constant 0 : index
    %c0_1 = arith.constant 0 : index
    %0 = vector.load %arg2[%c0, %c0_0, %c0_1] : memref<1x32x128xbf16, #tpu.memory_space<vmem>>, vector<1x32x128xbf16>
    %1 = vector.shape_cast %0 : vector<1x32x128xbf16> to vector<32x128xbf16>
    %c0_i32 = arith.constant 0 : i32
    %2 = arith.cmpi eq, %arg1, %c0_i32 : i32
    %3 = arith.extui %2 : i1 to i32
    %c0_i32_2 = arith.constant 0 : i32
    %4 = arith.cmpi ne, %3, %c0_i32_2 : i32
    scf.if %4 {
      %cst_53 = arith.constant 0.000000e+00 : bf16
      %54 = vector.broadcast %cst_53 : bf16 to vector<16x128xbf16>
      %c0_54 = arith.constant 0 : index
      %c0_55 = arith.constant 0 : index
      %55 = vector.load %arg11[%c0_54, %c0_55] : memref<48x128xbf16, #tpu.memory_space<vmem>>, vector<16x128xbf16>
      tpu.vector_store %arg11[%c0_54, %c0_55], %54 {strides = array<i32>} : memref<48x128xbf16, #tpu.memory_space<vmem>>, vector<16x128xbf16>,
    } else {
    }
    %c0_i32_3 = arith.constant 0 : i32
    %5 = arith.cmpi sgt, %arg1, %c0_i32_3 : i32
    %6 = arith.extui %5 : i1 to i32
    %c0_i32_4 = arith.constant 0 : i32
    %7 = arith.cmpi ne, %6, %c0_i32_4 : i32
    scf.if %7 {
      %c0_53 = arith.constant 0 : index
      %c16_54 = arith.constant 16 : index
      %c0_55 = arith.constant 0 : index
      %54 = vector.load %arg3[%c0_53, %c16_54, %c0_55] : memref<1x32x128xbf16, #tpu.memory_space<vmem>>, vector<1x16x128xbf16>
      %55 = vector.shape_cast %54 : vector<1x16x128xbf16> to vector<16x128xbf16>
      %c0_56 = arith.constant 0 : index
      %c0_57 = arith.constant 0 : index
      %56 = vector.load %arg11[%c0_56, %c0_57] : memref<48x128xbf16, #tpu.memory_space<vmem>>, vector<16x128xbf16>
      tpu.vector_store %arg11[%c0_56, %c0_57], %55 {strides = array<i32>} : memref<48x128xbf16, #tpu.memory_space<vmem>>, vector<16x128xbf16>,
    } else {
    }
    %c16 = arith.constant 16 : index
    %c0_5 = arith.constant 0 : index
    %8 = vector.load %arg11[%c16, %c0_5] : memref<48x128xbf16, #tpu.memory_space<vmem>>, vector<32x128xbf16>
    tpu.vector_store %arg11[%c16, %c0_5], %1 {strides = array<i32>} : memref<48x128xbf16, #tpu.memory_space<vmem>>, vector<32x128xbf16>,
    %c6 = arith.constant 6 : index
    %c0_6 = arith.constant 0 : index
    %9 = vector.load %arg11[%c6, %c0_6] : memref<48x128xbf16, #tpu.memory_space<vmem>>, vector<40x128xbf16>
    %c0_7 = arith.constant 0 : index
    %c0_8 = arith.constant 0 : index
    %10 = vector.load %arg13[%c0_7, %c0_8] : memref<40x384xbf16, #tpu.memory_space<vmem>>, vector<40x128xbf16>
    tpu.vector_store %arg13[%c0_7, %c0_8], %9 {strides = array<i32>} : memref<40x384xbf16, #tpu.memory_space<vmem>>, vector<40x128xbf16>,
    %c7 = arith.constant 7 : index
    %c0_9 = arith.constant 0 : index
    %11 = vector.load %arg11[%c7, %c0_9] : memref<48x128xbf16, #tpu.memory_space<vmem>>, vector<40x128xbf16>
    %c0_10 = arith.constant 0 : index
    %c128 = arith.constant 128 : index
    %12 = vector.load %arg13[%c0_10, %c128] : memref<40x384xbf16, #tpu.memory_space<vmem>>, vector<40x128xbf16>
    tpu.vector_store %arg13[%c0_10, %c128], %11 {strides = array<i32>} : memref<40x384xbf16, #tpu.memory_space<vmem>>, vector<40x128xbf16>,
    %c8 = arith.constant 8 : index
    %c0_11 = arith.constant 0 : index
    %13 = vector.load %arg11[%c8, %c0_11] : memref<48x128xbf16, #tpu.memory_space<vmem>>, vector<40x128xbf16>
    %c0_12 = arith.constant 0 : index
    %c256 = arith.constant 256 : index
    %14 = vector.load %arg13[%c0_12, %c256] : memref<40x384xbf16, #tpu.memory_space<vmem>>, vector<40x128xbf16>
    tpu.vector_store %arg13[%c0_12, %c256], %13 {strides = array<i32>} : memref<40x384xbf16, #tpu.memory_space<vmem>>, vector<40x128xbf16>,
    %c0_13 = arith.constant 0 : index
    %c0_14 = arith.constant 0 : index
    %15 = vector.load %arg13[%c0_13, %c0_14] : memref<40x384xbf16, #tpu.memory_space<vmem>>, vector<40x384xbf16>
    %c0_15 = arith.constant 0 : index
    %c0_16 = arith.constant 0 : index
    %16 = vector.load %arg4[%c0_15, %c0_16] : memref<384x128xbf16, #tpu.memory_space<vmem>>, vector<384x128xbf16>
    %cst = arith.constant dense<0.000000e+00> : vector<40x128xf32>
    %17 = tpu.matmul %15, %16, %cst {dimension_numbers = #tpu.dot_dimension_numbers<[1], [0], [0], [1], [0, 0, 1, 1], [], []>} : vector<40x384xbf16>, vector<384x128xbf16>, vector<40x128xf32> -> vector<40x128xf32>
    %c0_17 = arith.constant 0 : index
    %c0_18 = arith.constant 0 : index
    %18 = vector.load %arg5[%c0_17, %c0_18] : memref<1x128xf32, #tpu.memory_space<vmem>>, vector<1x128xf32>
    %19 = vector.broadcast %18 : vector<1x128xf32> to vector<40x128xf32>
    %20 = arith.addf %17, %19 : vector<40x128xf32>
    %cst_19 = arith.constant 0.000000e+00 : f32
    %21 = vector.broadcast %cst_19 : f32 to vector<40x128xf32>
    %22 = arith.maximumf %20, %21 : vector<40x128xf32>
    %23 = arith.truncf %22 : vector<40x128xf32> to vector<40x128xbf16>
    %c0_20 = arith.constant 0 : index
    %c0_21 = arith.constant 0 : index
    %24 = vector.load %arg12[%c0_20, %c0_21] : memref<40x128xbf16, #tpu.memory_space<vmem>>, vector<40x128xbf16>
    tpu.vector_store %arg12[%c0_20, %c0_21], %23 {strides = array<i32>} : memref<40x128xbf16, #tpu.memory_space<vmem>>, vector<40x128xbf16>,
    %c0_i32_22 = arith.constant 0 : i32
    %25 = arith.cmpi eq, %arg1, %c0_i32_22 : i32
    %26 = arith.extui %25 : i1 to i32
    %c0_i32_23 = arith.constant 0 : i32
    %27 = arith.cmpi ne, %26, %c0_i32_23 : i32
    scf.if %27 {
      %cst_53 = arith.constant 0.000000e+00 : bf16
      %54 = vector.broadcast %cst_53 : bf16 to vector<8x128xbf16>
      %c0_54 = arith.constant 0 : index
      %c0_55 = arith.constant 0 : index
      %55 = vector.load %arg12[%c0_54, %c0_55] : memref<40x128xbf16, #tpu.memory_space<vmem>>, vector<8x128xbf16>
      tpu.vector_store %arg12[%c0_54, %c0_55], %54 {strides = array<i32>} : memref<40x128xbf16, #tpu.memory_space<vmem>>, vector<8x128xbf16>,
    } else {
    }
    %c6_24 = arith.constant 6 : index
    %c0_25 = arith.constant 0 : index
    %28 = vector.load %arg12[%c6_24, %c0_25] : memref<40x128xbf16, #tpu.memory_space<vmem>>, vector<32x128xbf16>
    %c0_26 = arith.constant 0 : index
    %c0_27 = arith.constant 0 : index
    %29 = vector.load %arg13[%c0_26, %c0_27] : memref<40x384xbf16, #tpu.memory_space<vmem>>, vector<32x128xbf16>
    tpu.vector_store %arg13[%c0_26, %c0_27], %28 {strides = array<i32>} : memref<40x384xbf16, #tpu.memory_space<vmem>>, vector<32x128xbf16>,
    %c7_28 = arith.constant 7 : index
    %c0_29 = arith.constant 0 : index
    %30 = vector.load %arg12[%c7_28, %c0_29] : memref<40x128xbf16, #tpu.memory_space<vmem>>, vector<32x128xbf16>
    %c0_30 = arith.constant 0 : index
    %c128_31 = arith.constant 128 : index
    %31 = vector.load %arg13[%c0_30, %c128_31] : memref<40x384xbf16, #tpu.memory_space<vmem>>, vector<32x128xbf16>
    tpu.vector_store %arg13[%c0_30, %c128_31], %30 {strides = array<i32>} : memref<40x384xbf16, #tpu.memory_space<vmem>>, vector<32x128xbf16>,
    %c8_32 = arith.constant 8 : index
    %c0_33 = arith.constant 0 : index
    %32 = vector.load %arg12[%c8_32, %c0_33] : memref<40x128xbf16, #tpu.memory_space<vmem>>, vector<32x128xbf16>
    %c0_34 = arith.constant 0 : index
    %c256_35 = arith.constant 256 : index
    %33 = vector.load %arg13[%c0_34, %c256_35] : memref<40x384xbf16, #tpu.memory_space<vmem>>, vector<32x128xbf16>
    tpu.vector_store %arg13[%c0_34, %c256_35], %32 {strides = array<i32>} : memref<40x384xbf16, #tpu.memory_space<vmem>>, vector<32x128xbf16>,
    %c0_36 = arith.constant 0 : index
    %c0_37 = arith.constant 0 : index
    %34 = vector.load %arg13[%c0_36, %c0_37] : memref<40x384xbf16, #tpu.memory_space<vmem>>, vector<32x384xbf16>
    %c0_38 = arith.constant 0 : index
    %c0_39 = arith.constant 0 : index
    %35 = vector.load %arg6[%c0_38, %c0_39] : memref<384x128xbf16, #tpu.memory_space<vmem>>, vector<384x128xbf16>
    %cst_40 = arith.constant dense<0.000000e+00> : vector<32x128xf32>
    %36 = tpu.matmul %34, %35, %cst_40 {dimension_numbers = #tpu.dot_dimension_numbers<[1], [0], [0], [1], [0, 0, 1, 1], [], []>} : vector<32x384xbf16>, vector<384x128xbf16>, vector<32x128xf32> -> vector<32x128xf32>
    %c0_41 = arith.constant 0 : index
    %c0_42 = arith.constant 0 : index
    %37 = vector.load %arg7[%c0_41, %c0_42] : memref<1x128xf32, #tpu.memory_space<vmem>>, vector<1x128xf32>
    %38 = vector.broadcast %37 : vector<1x128xf32> to vector<32x128xf32>
    %39 = arith.addf %36, %38 : vector<32x128xf32>
    %cst_43 = arith.constant 0.000000e+00 : f32
    %40 = vector.broadcast %cst_43 : f32 to vector<32x128xf32>
    %41 = arith.maximumf %39, %40 : vector<32x128xf32>
    %c0_44 = arith.constant 0 : index
    %c0_45 = arith.constant 0 : index
    %42 = vector.load %arg8[%c0_44, %c0_45] : memref<128x128xbf16, #tpu.memory_space<vmem>>, vector<128x128xbf16>
    %cst_46 = arith.constant dense<0.000000e+00> : vector<32x128xf32>
    %43 = tpu.matmul %1, %42, %cst_46 {dimension_numbers = #tpu.dot_dimension_numbers<[1], [0], [0], [1], [0, 0, 1, 1], [], []>} : vector<32x128xbf16>, vector<128x128xbf16>, vector<32x128xf32> -> vector<32x128xf32>
    %c0_47 = arith.constant 0 : index
    %c0_48 = arith.constant 0 : index
    %44 = vector.load %arg9[%c0_47, %c0_48] : memref<1x128xf32, #tpu.memory_space<vmem>>, vector<1x128xf32>
    %45 = vector.broadcast %44 : vector<1x128xf32> to vector<32x128xf32>
    %46 = arith.addf %43, %45 : vector<32x128xf32>
    %47 = arith.addf %41, %46 : vector<32x128xf32>
    %cst_49 = arith.constant 0.000000e+00 : f32
    %48 = vector.broadcast %cst_49 : f32 to vector<32x128xf32>
    %49 = arith.maximumf %47, %48 : vector<32x128xf32>
    %50 = arith.truncf %49 : vector<32x128xf32> to vector<32x128xbf16>
    %c0_50 = arith.constant 0 : index
    %c0_51 = arith.constant 0 : index
    %c0_52 = arith.constant 0 : index
    %51 = vector.load %arg10[%c0_50, %c0_51, %c0_52] : memref<1x32x128xbf16, #tpu.memory_space<vmem>>, vector<1x32x128xbf16>
    %52 = vector.shape_cast %51 : vector<1x32x128xbf16> to vector<32x128xbf16>
    %53 = vector.shape_cast %50 : vector<32x128xbf16> to vector<1x32x128xbf16>
    tpu.vector_store %arg10[%c0_50, %c0_51, %c0_52], %53 {strides = array<i32>} : memref<1x32x128xbf16, #tpu.memory_space<vmem>>, vector<1x32x128xbf16>,
    return
  }
  func.func @transform_0(%arg0: i32, %arg1: i32) -> (i32, i32, i32) {
    %c0_i32 = arith.constant 0 : i32
    %c0_i32_0 = arith.constant 0 : i32
    return %arg0, %arg1, %c0_i32 : i32, i32, i32
  }
  func.func @transform_1(%arg0: i32, %arg1: i32) -> (i32, i32, i32) {
    %c1_i32 = arith.constant 1 : i32
    %0 = arith.subi %arg1, %c1_i32 : i32
    %c0_i32 = arith.constant 0 : i32
    %1 = arith.maxsi %0, %c0_i32 : i32
    %c0_i32_0 = arith.constant 0 : i32
    %c0_i32_1 = arith.constant 0 : i32
    return %arg0, %1, %c0_i32_0 : i32, i32, i32
  }
  func.func @transform_2(%arg0: i32, %arg1: i32) -> (i32, i32) {
    %c0_i32 = arith.constant 0 : i32
    %c0_i32_0 = arith.constant 0 : i32
    %c0_i32_1 = arith.constant 0 : i32
    return %c0_i32, %c0_i32_0 : i32, i32
  }
  func.func @transform_3(%arg0: i32, %arg1: i32) -> (i32, i32) {
    %c0_i32 = arith.constant 0 : i32
    %c0_i32_0 = arith.constant 0 : i32
    %c0_i32_1 = arith.constant 0 : i32
    return %c0_i32, %c0_i32_0 : i32, i32
  }
  func.func @transform_4(%arg0: i32, %arg1: i32) -> (i32, i32) {
    %c0_i32 = arith.constant 0 : i32
    %c0_i32_0 = arith.constant 0 : i32
    %c0_i32_1 = arith.constant 0 : i32
    return %c0_i32, %c0_i32_0 : i32, i32
  }
  func.func @transform_5(%arg0: i32, %arg1: i32) -> (i32, i32) {
    %c0_i32 = arith.constant 0 : i32
    %c0_i32_0 = arith.constant 0 : i32
    %c0_i32_1 = arith.constant 0 : i32
    return %c0_i32, %c0_i32_0 : i32, i32
  }
  func.func @transform_6(%arg0: i32, %arg1: i32) -> (i32, i32) {
    %c0_i32 = arith.constant 0 : i32
    %c0_i32_0 = arith.constant 0 : i32
    %c0_i32_1 = arith.constant 0 : i32
    return %c0_i32, %c0_i32_0 : i32, i32
  }
  func.func @transform_7(%arg0: i32, %arg1: i32) -> (i32, i32) {
    %c0_i32 = arith.constant 0 : i32
    %c0_i32_0 = arith.constant 0 : i32
    %c0_i32_1 = arith.constant 0 : i32
    return %c0_i32, %c0_i32_0 : i32, i32
  }
  func.func @transform_8(%arg0: i32, %arg1: i32) -> (i32, i32, i32) {
    %c0_i32 = arith.constant 0 : i32
    %c0_i32_0 = arith.constant 0 : i32
    return %arg0, %arg1, %c0_i32 : i32, i32, i32
  }
}

module attributes {stable_mosaic.version = 11 : i64} {
  func.func @_temporal_block_kernel(%arg0: i32, %arg1: i32, %arg2: memref<1x32x128xbf16, #tpu.memory_space<vmem>>, %arg3: memref<1x32x128xbf16, #tpu.memory_space<vmem>>, %arg4: memref<384x128xbf16, #tpu.memory_space<vmem>>, %arg5: memref<1x128xf32, #tpu.memory_space<vmem>>, %arg6: memref<384x128xbf16, #tpu.memory_space<vmem>>, %arg7: memref<1x128xf32, #tpu.memory_space<vmem>>, %arg8: memref<128x128xbf16, #tpu.memory_space<vmem>>, %arg9: memref<1x128xf32, #tpu.memory_space<vmem>>, %arg10: memref<1x32x128xbf16, #tpu.memory_space<vmem>>, %arg11: memref<48x128xbf16, #tpu.memory_space<vmem>>, %arg12: memref<40x128xbf16, #tpu.memory_space<vmem>>, %arg13: memref<40x384xbf16, #tpu.memory_space<vmem>>) attributes {dimension_semantics = [#tpu.dimension_semantics<parallel>, #tpu.dimension_semantics<parallel>], iteration_bounds = array<i64: 2, 2>, scalar_prefetch = 0 : i64, scratch_operands = 3 : i64, tpu.core_type = #tpu.core_type<tc>, window_params = [{transform_indices = @transform_0, window_bounds = array<i64: 1, 32, 128>}, {transform_indices = @transform_1, window_bounds = array<i64: 1, 32, 128>}, {pipeline_mode = #tpu.pipeline_mode<synchronous>, transform_indices = @transform_2, window_bounds = array<i64: 384, 128>}, {pipeline_mode = #tpu.pipeline_mode<synchronous>, transform_indices = @transform_3, window_bounds = array<i64: 1, 128>}, {pipeline_mode = #tpu.pipeline_mode<synchronous>, transform_indices = @transform_4, window_bounds = array<i64: 384, 128>}, {pipeline_mode = #tpu.pipeline_mode<synchronous>, transform_indices = @transform_5, window_bounds = array<i64: 1, 128>}, {pipeline_mode = #tpu.pipeline_mode<synchronous>, transform_indices = @transform_6, window_bounds = array<i64: 128, 128>}, {pipeline_mode = #tpu.pipeline_mode<synchronous>, transform_indices = @transform_7, window_bounds = array<i64: 1, 128>}, {transform_indices = @transform_8, window_bounds = array<i64: 1, 32, 128>}]} {
    %c0 = arith.constant 0 : index
    %c0_0 = arith.constant 0 : index
    %c0_1 = arith.constant 0 : index
    %0 = vector.load %arg2[%c0, %c0_0, %c0_1] : memref<1x32x128xbf16, #tpu.memory_space<vmem>>, vector<1x32x128xbf16>
    %1 = vector.shape_cast %0 : vector<1x32x128xbf16> to vector<32x128xbf16>
    %c0_i32 = arith.constant 0 : i32
    %2 = arith.cmpi eq, %arg1, %c0_i32 : i32
    %3 = arith.extui %2 : i1 to i32
    %c0_i32_2 = arith.constant 0 : i32
    %4 = arith.cmpi ne, %3, %c0_i32_2 : i32
    scf.if %4 {
      %cst_54 = arith.constant 0.000000e+00 : bf16
      %58 = vector.broadcast %cst_54 : bf16 to vector<16x128xbf16>
      %c0_55 = arith.constant 0 : index
      %c0_56 = arith.constant 0 : index
      %59 = vector.load %arg11[%c0_55, %c0_56] : memref<48x128xbf16, #tpu.memory_space<vmem>>, vector<16x128xbf16>
      tpu.vector_store %arg11[%c0_55, %c0_56], %58 {strides = array<i32>} : memref<48x128xbf16, #tpu.memory_space<vmem>>, vector<16x128xbf16>,
    } else {
    }
    %c0_i32_3 = arith.constant 0 : i32
    %5 = arith.cmpi sgt, %arg1, %c0_i32_3 : i32
    %6 = arith.extui %5 : i1 to i32
    %c0_i32_4 = arith.constant 0 : i32
    %7 = arith.cmpi ne, %6, %c0_i32_4 : i32
    scf.if %7 {
      %c0_54 = arith.constant 0 : index
      %c16_55 = arith.constant 16 : index
      %c0_56 = arith.constant 0 : index
      %58 = vector.load %arg3[%c0_54, %c16_55, %c0_56] : memref<1x32x128xbf16, #tpu.memory_space<vmem>>, vector<1x16x128xbf16>
      %59 = vector.shape_cast %58 : vector<1x16x128xbf16> to vector<16x128xbf16>
      %c0_57 = arith.constant 0 : index
      %c0_58 = arith.constant 0 : index
      %60 = vector.load %arg11[%c0_57, %c0_58] : memref<48x128xbf16, #tpu.memory_space<vmem>>, vector<16x128xbf16>
      tpu.vector_store %arg11[%c0_57, %c0_58], %59 {strides = array<i32>} : memref<48x128xbf16, #tpu.memory_space<vmem>>, vector<16x128xbf16>,
    } else {
    }
    %c16 = arith.constant 16 : index
    %c0_5 = arith.constant 0 : index
    %8 = vector.load %arg11[%c16, %c0_5] : memref<48x128xbf16, #tpu.memory_space<vmem>>, vector<32x128xbf16>
    tpu.vector_store %arg11[%c16, %c0_5], %1 {strides = array<i32>} : memref<48x128xbf16, #tpu.memory_space<vmem>>, vector<32x128xbf16>,
    %c4 = arith.constant 4 : index
    %c0_6 = arith.constant 0 : index
    %9 = vector.load %arg11[%c4, %c0_6] : memref<48x128xbf16, #tpu.memory_space<vmem>>, vector<40x128xbf16>
    %c0_7 = arith.constant 0 : index
    %c0_8 = arith.constant 0 : index
    %10 = vector.load %arg13[%c0_7, %c0_8] : memref<40x384xbf16, #tpu.memory_space<vmem>>, vector<40x128xbf16>
    tpu.vector_store %arg13[%c0_7, %c0_8], %9 {strides = array<i32>} : memref<40x384xbf16, #tpu.memory_space<vmem>>, vector<40x128xbf16>,
    %c6 = arith.constant 6 : index
    %c0_9 = arith.constant 0 : index
    %11 = vector.load %arg11[%c6, %c0_9] : memref<48x128xbf16, #tpu.memory_space<vmem>>, vector<40x128xbf16>
    %c0_10 = arith.constant 0 : index
    %c128 = arith.constant 128 : index
    %12 = vector.load %arg13[%c0_10, %c128] : memref<40x384xbf16, #tpu.memory_space<vmem>>, vector<40x128xbf16>
    tpu.vector_store %arg13[%c0_10, %c128], %11 {strides = array<i32>} : memref<40x384xbf16, #tpu.memory_space<vmem>>, vector<40x128xbf16>,
    %c8 = arith.constant 8 : index
    %c0_11 = arith.constant 0 : index
    %13 = vector.load %arg11[%c8, %c0_11] : memref<48x128xbf16, #tpu.memory_space<vmem>>, vector<40x128xbf16>
    %c0_12 = arith.constant 0 : index
    %c256 = arith.constant 256 : index
    %14 = vector.load %arg13[%c0_12, %c256] : memref<40x384xbf16, #tpu.memory_space<vmem>>, vector<40x128xbf16>
    tpu.vector_store %arg13[%c0_12, %c256], %13 {strides = array<i32>} : memref<40x384xbf16, #tpu.memory_space<vmem>>, vector<40x128xbf16>,
    %c0_13 = arith.constant 0 : index
    %c0_14 = arith.constant 0 : index
    %15 = vector.load %arg13[%c0_13, %c0_14] : memref<40x384xbf16, #tpu.memory_space<vmem>>, vector<40x384xbf16>
    %c0_15 = arith.constant 0 : index
    %c0_16 = arith.constant 0 : index
    %16 = vector.load %arg4[%c0_15, %c0_16] : memref<384x128xbf16, #tpu.memory_space<vmem>>, vector<384x128xbf16>
    %cst = arith.constant dense<0.000000e+00> : vector<40x128xf32>
    %17 = tpu.matmul %15, %16, %cst {dimension_numbers = #tpu.dot_dimension_numbers<[1], [0], [0], [1], [0, 0, 1, 1], [], []>} : vector<40x384xbf16>, vector<384x128xbf16>, vector<40x128xf32> -> vector<40x128xf32>
    %c0_17 = arith.constant 0 : index
    %c0_18 = arith.constant 0 : index
    %18 = vector.load %arg5[%c0_17, %c0_18] : memref<1x128xf32, #tpu.memory_space<vmem>>, vector<1x128xf32>
    %19 = vector.broadcast %18 : vector<1x128xf32> to vector<40x128xf32>
    %20 = arith.addf %17, %19 : vector<40x128xf32>
    %cst_19 = arith.constant 0.000000e+00 : f32
    %21 = vector.broadcast %cst_19 : f32 to vector<40x128xf32>
    %22 = arith.maximumf %20, %21 : vector<40x128xf32>
    %23 = arith.truncf %22 : vector<40x128xf32> to vector<40x128xbf16>
    %c0_20 = arith.constant 0 : index
    %c0_21 = arith.constant 0 : index
    %24 = vector.load %arg12[%c0_20, %c0_21] : memref<40x128xbf16, #tpu.memory_space<vmem>>, vector<40x128xbf16>
    tpu.vector_store %arg12[%c0_20, %c0_21], %23 {strides = array<i32>} : memref<40x128xbf16, #tpu.memory_space<vmem>>, vector<40x128xbf16>,
    %c0_i32_22 = arith.constant 0 : i32
    %25 = arith.cmpi eq, %arg1, %c0_i32_22 : i32
    %26 = arith.extui %25 : i1 to i32
    %c0_i32_23 = arith.constant 0 : i32
    %27 = arith.cmpi ne, %26, %c0_i32_23 : i32
    scf.if %27 {
      %cst_54 = arith.constant 0.000000e+00 : bf16
      %58 = vector.broadcast %cst_54 : bf16 to vector<8x128xbf16>
      %c0_55 = arith.constant 0 : index
      %c0_56 = arith.constant 0 : index
      %59 = vector.load %arg12[%c0_55, %c0_56] : memref<40x128xbf16, #tpu.memory_space<vmem>>, vector<8x128xbf16>
      tpu.vector_store %arg12[%c0_55, %c0_56], %58 {strides = array<i32>} : memref<40x128xbf16, #tpu.memory_space<vmem>>, vector<8x128xbf16>,
    } else {
    }
    %c4_24 = arith.constant 4 : index
    %c0_25 = arith.constant 0 : index
    %28 = vector.load %arg12[%c4_24, %c0_25] : memref<40x128xbf16, #tpu.memory_space<vmem>>, vector<32x128xbf16>
    %c0_26 = arith.constant 0 : index
    %c0_27 = arith.constant 0 : index
    %29 = vector.load %arg13[%c0_26, %c0_27] : memref<40x384xbf16, #tpu.memory_space<vmem>>, vector<32x128xbf16>
    tpu.vector_store %arg13[%c0_26, %c0_27], %28 {strides = array<i32>} : memref<40x384xbf16, #tpu.memory_space<vmem>>, vector<32x128xbf16>,
    %c6_28 = arith.constant 6 : index
    %c0_29 = arith.constant 0 : index
    %30 = vector.load %arg12[%c6_28, %c0_29] : memref<40x128xbf16, #tpu.memory_space<vmem>>, vector<32x128xbf16>
    %c0_30 = arith.constant 0 : index
    %c128_31 = arith.constant 128 : index
    %31 = vector.load %arg13[%c0_30, %c128_31] : memref<40x384xbf16, #tpu.memory_space<vmem>>, vector<32x128xbf16>
    tpu.vector_store %arg13[%c0_30, %c128_31], %30 {strides = array<i32>} : memref<40x384xbf16, #tpu.memory_space<vmem>>, vector<32x128xbf16>,
    %c8_32 = arith.constant 8 : index
    %c0_33 = arith.constant 0 : index
    %32 = vector.load %arg12[%c8_32, %c0_33] : memref<40x128xbf16, #tpu.memory_space<vmem>>, vector<32x128xbf16>
    %c0_34 = arith.constant 0 : index
    %c256_35 = arith.constant 256 : index
    %33 = vector.load %arg13[%c0_34, %c256_35] : memref<40x384xbf16, #tpu.memory_space<vmem>>, vector<32x128xbf16>
    tpu.vector_store %arg13[%c0_34, %c256_35], %32 {strides = array<i32>} : memref<40x384xbf16, #tpu.memory_space<vmem>>, vector<32x128xbf16>,
    %c0_36 = arith.constant 0 : index
    %c0_37 = arith.constant 0 : index
    %34 = vector.load %arg13[%c0_36, %c0_37] : memref<40x384xbf16, #tpu.memory_space<vmem>>, vector<32x384xbf16>
    %c0_38 = arith.constant 0 : index
    %c0_39 = arith.constant 0 : index
    %35 = vector.load %arg6[%c0_38, %c0_39] : memref<384x128xbf16, #tpu.memory_space<vmem>>, vector<384x128xbf16>
    %cst_40 = arith.constant dense<0.000000e+00> : vector<32x128xf32>
    %36 = tpu.matmul %34, %35, %cst_40 {dimension_numbers = #tpu.dot_dimension_numbers<[1], [0], [0], [1], [0, 0, 1, 1], [], []>} : vector<32x384xbf16>, vector<384x128xbf16>, vector<32x128xf32> -> vector<32x128xf32>
    %c0_41 = arith.constant 0 : index
    %c0_42 = arith.constant 0 : index
    %37 = vector.load %arg7[%c0_41, %c0_42] : memref<1x128xf32, #tpu.memory_space<vmem>>, vector<1x128xf32>
    %38 = vector.broadcast %37 : vector<1x128xf32> to vector<32x128xf32>
    %39 = arith.addf %36, %38 : vector<32x128xf32>
    %cst_43 = arith.constant 0.000000e+00 : f32
    %40 = vector.broadcast %cst_43 : f32 to vector<32x128xf32>
    %41 = arith.maximumf %39, %40 : vector<32x128xf32>
    %42 = arith.extf %1 : vector<32x128xbf16> to vector<32x128xf32>
    %43 = arith.addf %41, %42 : vector<32x128xf32>
    %cst_44 = arith.constant 0.000000e+00 : f32
    %44 = vector.broadcast %cst_44 : f32 to vector<32x128xf32>
    %45 = arith.maximumf %43, %44 : vector<32x128xf32>
    %46 = arith.truncf %45 : vector<32x128xf32> to vector<32x128xbf16>
    %c0_45 = arith.constant 0 : index
    %c0_46 = arith.constant 0 : index
    %47 = vector.load %arg8[%c0_45, %c0_46] : memref<128x128xbf16, #tpu.memory_space<vmem>>, vector<128x128xbf16>
    %cst_47 = arith.constant dense<0.000000e+00> : vector<32x128xf32>
    %48 = tpu.matmul %46, %47, %cst_47 {dimension_numbers = #tpu.dot_dimension_numbers<[1], [0], [0], [1], [0, 0, 1, 1], [], []>} : vector<32x128xbf16>, vector<128x128xbf16>, vector<32x128xf32> -> vector<32x128xf32>
    %c0_48 = arith.constant 0 : index
    %c0_49 = arith.constant 0 : index
    %49 = vector.load %arg9[%c0_48, %c0_49] : memref<1x128xf32, #tpu.memory_space<vmem>>, vector<1x128xf32>
    %50 = vector.broadcast %49 : vector<1x128xf32> to vector<32x128xf32>
    %51 = arith.addf %48, %50 : vector<32x128xf32>
    %cst_50 = arith.constant 0.000000e+00 : f32
    %52 = vector.broadcast %cst_50 : f32 to vector<32x128xf32>
    %53 = arith.maximumf %51, %52 : vector<32x128xf32>
    %54 = arith.truncf %53 : vector<32x128xf32> to vector<32x128xbf16>
    %c0_51 = arith.constant 0 : index
    %c0_52 = arith.constant 0 : index
    %c0_53 = arith.constant 0 : index
    %55 = vector.load %arg10[%c0_51, %c0_52, %c0_53] : memref<1x32x128xbf16, #tpu.memory_space<vmem>>, vector<1x32x128xbf16>
    %56 = vector.shape_cast %55 : vector<1x32x128xbf16> to vector<32x128xbf16>
    %57 = vector.shape_cast %54 : vector<32x128xbf16> to vector<1x32x128xbf16>
    tpu.vector_store %arg10[%c0_51, %c0_52, %c0_53], %57 {strides = array<i32>} : memref<1x32x128xbf16, #tpu.memory_space<vmem>>, vector<1x32x128xbf16>,
    return
  }
  func.func @transform_0(%arg0: i32, %arg1: i32) -> (i32, i32, i32) {
    %c0_i32 = arith.constant 0 : i32
    %c0_i32_0 = arith.constant 0 : i32
    return %arg0, %arg1, %c0_i32 : i32, i32, i32
  }
  func.func @transform_1(%arg0: i32, %arg1: i32) -> (i32, i32, i32) {
    %c1_i32 = arith.constant 1 : i32
    %0 = arith.subi %arg1, %c1_i32 : i32
    %c0_i32 = arith.constant 0 : i32
    %1 = arith.maxsi %0, %c0_i32 : i32
    %c0_i32_0 = arith.constant 0 : i32
    %c0_i32_1 = arith.constant 0 : i32
    return %arg0, %1, %c0_i32_0 : i32, i32, i32
  }
  func.func @transform_2(%arg0: i32, %arg1: i32) -> (i32, i32) {
    %c0_i32 = arith.constant 0 : i32
    %c0_i32_0 = arith.constant 0 : i32
    %c0_i32_1 = arith.constant 0 : i32
    return %c0_i32, %c0_i32_0 : i32, i32
  }
  func.func @transform_3(%arg0: i32, %arg1: i32) -> (i32, i32) {
    %c0_i32 = arith.constant 0 : i32
    %c0_i32_0 = arith.constant 0 : i32
    %c0_i32_1 = arith.constant 0 : i32
    return %c0_i32, %c0_i32_0 : i32, i32
  }
  func.func @transform_4(%arg0: i32, %arg1: i32) -> (i32, i32) {
    %c0_i32 = arith.constant 0 : i32
    %c0_i32_0 = arith.constant 0 : i32
    %c0_i32_1 = arith.constant 0 : i32
    return %c0_i32, %c0_i32_0 : i32, i32
  }
  func.func @transform_5(%arg0: i32, %arg1: i32) -> (i32, i32) {
    %c0_i32 = arith.constant 0 : i32
    %c0_i32_0 = arith.constant 0 : i32
    %c0_i32_1 = arith.constant 0 : i32
    return %c0_i32, %c0_i32_0 : i32, i32
  }
  func.func @transform_6(%arg0: i32, %arg1: i32) -> (i32, i32) {
    %c0_i32 = arith.constant 0 : i32
    %c0_i32_0 = arith.constant 0 : i32
    %c0_i32_1 = arith.constant 0 : i32
    return %c0_i32, %c0_i32_0 : i32, i32
  }
  func.func @transform_7(%arg0: i32, %arg1: i32) -> (i32, i32) {
    %c0_i32 = arith.constant 0 : i32
    %c0_i32_0 = arith.constant 0 : i32
    %c0_i32_1 = arith.constant 0 : i32
    return %c0_i32, %c0_i32_0 : i32, i32
  }
  func.func @transform_8(%arg0: i32, %arg1: i32) -> (i32, i32, i32) {
    %c0_i32 = arith.constant 0 : i32
    %c0_i32_0 = arith.constant 0 : i32
    return %arg0, %arg1, %c0_i32 : i32, i32, i32
  }
}

module attributes {stable_mosaic.version = 11 : i64} {
  func.func @_output_layer_kernel(%arg0: i32, %arg1: i32, %arg2: memref<1x64x128xbf16, #tpu.memory_space<vmem>>, %arg3: memref<128x128xbf16, #tpu.memory_space<vmem>>, %arg4: memref<128x128xbf16, #tpu.memory_space<vmem>>, %arg5: memref<1x128xf32, #tpu.memory_space<vmem>>, %arg6: memref<1x1x128xf32, #tpu.memory_space<vmem>>) attributes {dimension_semantics = [#tpu.dimension_semantics<parallel>, #tpu.dimension_semantics<parallel>], iteration_bounds = array<i64: 2, 1>, scalar_prefetch = 0 : i64, scratch_operands = 0 : i64, tpu.core_type = #tpu.core_type<tc>, window_params = [{transform_indices = @transform_0, window_bounds = array<i64: 1, 64, 128>}, {transform_indices = @transform_1, window_bounds = array<i64: 128, 128>}, {transform_indices = @transform_2, window_bounds = array<i64: 128, 128>}, {transform_indices = @transform_3, window_bounds = array<i64: 1, 128>}, {transform_indices = @transform_4, window_bounds = array<i64: 1, 1, 128>}]} {
    %c0 = arith.constant 0 : index
    %c0_0 = arith.constant 0 : index
    %c0_1 = arith.constant 0 : index
    %0 = vector.load %arg2[%c0, %c0_0, %c0_1] : memref<1x64x128xbf16, #tpu.memory_space<vmem>>, vector<1x64x128xbf16>
    %1 = vector.shape_cast %0 : vector<1x64x128xbf16> to vector<64x128xbf16>
    %c0_2 = arith.constant 0 : index
    %c0_3 = arith.constant 0 : index
    %2 = vector.load %arg3[%c0_2, %c0_3] : memref<128x128xbf16, #tpu.memory_space<vmem>>, vector<128x128xbf16>
    %cst = arith.constant dense<0.000000e+00> : vector<64x128xf32>
    %3 = tpu.matmul %1, %2, %cst {dimension_numbers = #tpu.dot_dimension_numbers<[1], [0], [0], [1], [0, 0, 1, 1], [], []>} : vector<64x128xbf16>, vector<128x128xbf16>, vector<64x128xf32> -> vector<64x128xf32>
    %cst_4 = arith.constant dense<0xFF800000> : vector<128xf32>
    %4 = vector.multi_reduction <maximumf>, %3, %cst_4 [0] : vector<64x128xf32> to vector<128xf32>
    %5 = vector.shape_cast %4 : vector<128xf32> to vector<1x128xf32>
    %6 = vector.broadcast %5 : vector<1x128xf32> to vector<64x128xf32>
    %7 = arith.subf %3, %6 : vector<64x128xf32>
    %8 = math.exp %7 : vector<64x128xf32>
    %cst_5 = arith.constant dense<0.000000e+00> : vector<128xf32>
    %9 = vector.multi_reduction <add>, %8, %cst_5 [0] : vector<64x128xf32> to vector<128xf32>
    %10 = vector.shape_cast %9 : vector<128xf32> to vector<1x128xf32>
    %11 = arith.truncf %8 : vector<64x128xf32> to vector<64x128xbf16>
    %cst_6 = arith.constant dense<0.000000e+00> : vector<128x128xf32>
    %12 = tpu.matmul %1, %11, %cst_6 {dimension_numbers = #tpu.dot_dimension_numbers<[0], [0], [1], [1], [0, 1, 1, 1], [], []>} : vector<64x128xbf16>, vector<64x128xbf16>, vector<128x128xf32> -> vector<128x128xf32>
    %c0_7 = arith.constant 0 : index
    %c0_8 = arith.constant 0 : index
    %13 = vector.load %arg4[%c0_7, %c0_8] : memref<128x128xbf16, #tpu.memory_space<vmem>>, vector<128x128xbf16>
    %14 = arith.extf %13 : vector<128x128xbf16> to vector<128x128xf32>
    %15 = arith.mulf %14, %12 : vector<128x128xf32>
    %cst_9 = arith.constant dense<0.000000e+00> : vector<128xf32>
    %16 = vector.multi_reduction <add>, %15, %cst_9 [0] : vector<128x128xf32> to vector<128xf32>
    %17 = vector.shape_cast %16 : vector<128xf32> to vector<1x128xf32>
    %18 = tpu.reciprocal %10 {approx = true} : vector<1x128xf32> -> vector<1x128xf32>
    %19 = arith.mulf %17, %18 : vector<1x128xf32>
    %c0_10 = arith.constant 0 : index
    %c0_11 = arith.constant 0 : index
    %20 = vector.load %arg5[%c0_10, %c0_11] : memref<1x128xf32, #tpu.memory_space<vmem>>, vector<1x128xf32>
    %21 = arith.addf %19, %20 : vector<1x128xf32>
    %c0_12 = arith.constant 0 : index
    %c0_13 = arith.constant 0 : index
    %c0_14 = arith.constant 0 : index
    %22 = vector.load %arg6[%c0_12, %c0_13, %c0_14] : memref<1x1x128xf32, #tpu.memory_space<vmem>>, vector<1x1x128xf32>
    %23 = vector.shape_cast %22 : vector<1x1x128xf32> to vector<1x128xf32>
    %24 = vector.shape_cast %21 : vector<1x128xf32> to vector<1x1x128xf32>
    tpu.vector_store %arg6[%c0_12, %c0_13, %c0_14], %24 {strides = array<i32>} : memref<1x1x128xf32, #tpu.memory_space<vmem>>, vector<1x1x128xf32>,
    return
  }
  func.func @transform_0(%arg0: i32, %arg1: i32) -> (i32, i32, i32) {
    %c0_i32 = arith.constant 0 : i32
    %c0_i32_0 = arith.constant 0 : i32
    %c0_i32_1 = arith.constant 0 : i32
    return %arg0, %c0_i32, %c0_i32_0 : i32, i32, i32
  }
  func.func @transform_1(%arg0: i32, %arg1: i32) -> (i32, i32) {
    %c0_i32 = arith.constant 0 : i32
    %c0_i32_0 = arith.constant 0 : i32
    return %c0_i32, %arg1 : i32, i32
  }
  func.func @transform_2(%arg0: i32, %arg1: i32) -> (i32, i32) {
    %c0_i32 = arith.constant 0 : i32
    %c0_i32_0 = arith.constant 0 : i32
    return %c0_i32, %arg1 : i32, i32
  }
  func.func @transform_3(%arg0: i32, %arg1: i32) -> (i32, i32) {
    %c0_i32 = arith.constant 0 : i32
    %c0_i32_0 = arith.constant 0 : i32
    return %c0_i32, %arg1 : i32, i32
  }
  func.func @transform_4(%arg0: i32, %arg1: i32) -> (i32, i32, i32) {
    %c0_i32 = arith.constant 0 : i32
    %c0_i32_0 = arith.constant 0 : i32
    return %arg0, %c0_i32, %arg1 : i32, i32, i32
  }
}

</mosaic_0001>

<bundles_post_ra>
// kernel: _lambda_.5
= control target key start
LH: loop header
LB: loop body
LE: loop exit
PB: predicated region body
PF: predicated region fallthrough
CT: control target
= control target key end

     0   :  { %9 = vsyncpa [#allocation3], 0  ;;  %s1313_s0 = inlined_call_operand.vmem [shape: bf16[2,64,128], index: 0, kind: input, shape index: {}]   ;;  %s1314_s1 = inlined_call_operand.vmem [shape: bf16[128,128], index: 1, kind: input, shape index: {}]   ;;  %s1315_s2 = inlined_call_operand.vmem [shape: bf16[128,128], index: 2, kind: input, shape index: {}]   ;;  %s1316_s3 = inlined_call_operand.vmem [shape: f32[1,128], index: 3, kind: input, shape index: {}]   ;;  %s1317_s4 = inlined_call_operand.hbm [shape: f32[2,1,128], index: 4, kind: output, shape index: {}]  }
   0x1   :  { %11 = vsyncpa [#allocation3 + $0x1], 0  ;;  %s1142_s15 = smov 0   ;;  %s1144_s16 = smov 0  }
   0x2   :  { %s1146_s17 = smov 0   ;;  %s1148_s18 = smov 0  }
   0x3   :  { %s1150_s19 = smov 0   ;;  %s1152_s20 = smov 0  }
   0x4 LB: > { %s805_s21 = sadd.s32 4294967295, %s1114_s20   ;;  %s806_s22 = sadd.s32 4294967294, %s1114_s20   ;;  %s1114_s20 = sphi %s1152_s20, %s17_s20   ;;  %s1110_s19 = sphi %s1150_s19, %s1324_s19   ;;  %s1106_s18 = sphi %s1148_s18, %s1323_s18   ;;  %s1102_s17 = sphi %s1146_s17, %s1322_s17   ;;  %s1098_s16 = sphi %s1144_s16, %s1321_s16   ;;  %s1094_s15 = sphi %s1142_s15, %s1320_s15  }
   0x5   : > { %s29_s23 = sadd.s32 1, %s1110_s19  ;;  %s142_s24 = sadd.s32 1, %s1102_s17 }
   0x6   : > { %p31_p0 = scmp.ge.s32.totalorder %s29_s23, 2  ;;  %p152_p1 = scmp.ne.s32.totalorder %s1102_s17, %s1098_s16 }
   0x7   : > { %p153_p2 = scmp.eq.s32.totalorder %s805_s21, 1  ;;  %p158_p3 = scmp.ne.s32.totalorder %s1098_s16, %s1094_s15 }
   0x8   : > { %s1326_s23 = smov (%p31_p0, %s29_s23), 0  ;;  %p159_p5 = scmp.eq.s32.totalorder %s806_s22, 1 }
   0x9   : > { %p1182_p4 = por %p153_p2, %p152_p1  ;;  %s137_s26 = ssub.s32 %s1110_s19, %s1326_s23 }
   0xa   : > { %p812_p6 = scmp.ge.s32.totalorder %s1114_s20, 1  ;;  %p140_p7 = scmp.eq.s32.totalorder %s137_s26, 0 }
   0xb   : > { %p1189_p8 = por %p159_p5, %p158_p3  ;;  %p205_p9 = scmp.lt.s32.totalorder %s1114_s20, 3 }
   0xc   : > { %s1195_s28 = scalar_select %p140_p7, %s1102_s17, %s142_s24  }
   0xd   : > { %p206_p10 = pnand %p812_p6, %p205_p9 }
   0xe   : > { %v1006_v0 = vld [vmem:[%s1314_s1] sm:$0xff] (!%p206_p10)   ;;  %p241_p11 = scmp.lt.s32.totalorder (!%p206_p10), %s1106_s18, 1  ;;  %v1007_v1 = vld [vmem:[%s1314_s1 + $0x8] sm:$0xff] (!%p206_p10)   ;;  %v1008_v2 = vld [vmem:[%s1314_s1 + $0x10] sm:$0xff] (!%p206_p10)   ;;  %vm489_vm0 = vcmask (!%p206_p10), 523264   ;;  %s239_s8 = sand.u32 (!%p206_p10), 1, %s1098_s16  }
   0xf   : > { %209 = sbr.rel (%p206_p10) target bundleno = 599 (0x257), region = 36  ;;  %902 = vmatprep.subr.bf16.mxu0 (!%p206_p10), %v1006_v0  ;;  %v1009_v3 = vld [vmem:[%s1314_s1 + $0x18] sm:$0xff] (!%p206_p10)   ;;  %v1010_v5 = vld [vmem:[%s1314_s1 + $0x20] sm:$0xff] (!%p206_p10)   ;;  %v1011_v7 = vld [vmem:[%s1314_s1 + $0x28] sm:$0xff] (!%p206_p10)   ;;  %s835_s11 = sshll.u32 (!%p206_p10), %s1106_s18, 4 }
  0x10   : > { %903 = vmatpush3.bf16.msra.mxu0 (!%p206_p10), %v1006_v0  ;;  %v1012_v9 = vld [vmem:[%s1314_s1 + $0x30] sm:$0xff] (!%p206_p10)   ;;  %v1013_v11 = vld [vmem:[%s1314_s1 + $0x38] sm:$0xff] (!%p206_p10)   ;;  %s240_s12 = scalar_lea.vmem (!%p206_p10), [#allocation2], %s239_s8  ;;  %s1266_s22 = scalar_lea.hbm (!%p206_p10), %s1317_s4, %s835_s11 }
  0x11   : > { %904 = vmatprep.subr.bf16.mxu0 (!%p206_p10), %v1007_v1  ;;  %s686_s24 = scalar_lea.sflag (!%p206_p10), [#allocation3], %s239_s8 }
  0x14   : > { %905 = vmatpush3.bf16.msra.mxu0 (!%p206_p10), %v1007_v1 }
  0x15   : > { %906 = vmatprep.subr.bf16.mxu0 (!%p206_p10), %v1008_v2 }
  0x16   : > { %s242_s7 = scalar_select %p241_p11, %s1106_s18, 1 }
  0x17   : > { %s1116_s18 = smov [#allocation2]  }
  0x18   : > { %s838_s10 = sshll.u32 %s242_s7, 5  ;;  %907 = vmatpush3.bf16.msra.mxu0 %v1008_v2  ;;  %s1040_s29 = sshll.u32 %s1116_s18, 4  ;;  %s1041_s29 = int_to_ptr.vmem [resolvable:$false] %s1040_s29 }
  0x19   : > { %s245_s13 = scalar_lea.vmem %s1313_s0, %s838_s10  ;;  %908 = vmatprep.subr.bf16.mxu0 %v1009_v3  ;;  %s1042_s30 = scalar_lea.vmem %s1041_s29, 32 }
  0x1a   : > { %v1014_v4 = vld [vmem:[%s245_s13] sm:$0xff]   ;;  %v1015_v6 = vld [vmem:[%s245_s13 + $0x8] sm:$0xff]   ;;  %v1016_v8 = vld [vmem:[%s245_s13 + $0x10] sm:$0xff]  }
  0x1b   : > { %918 = vmatprep.mubr.bf16.mxu0 %v1014_v4  ;;  %473 = vxpose.xlu0.c.b16.start [1/4] (short) %v1014_v4, 128  ;;  %v1017_v10 = vld [vmem:[%s245_s13 + $0x18] sm:$0xff]   ;;  %s699_s13 = sshll.u32 %s240_s12, 4  ;;  %s1268_s13 = int_to_ptr.vmem [resolvable:$true] %s699_s13 }
  0x1c   : > { %909 = vmatpush3.bf16.msra.mxu0 %v1009_v3  ;;  %s1036_s26 = scalar_lea.vmem %s1268_s13, 16  ;;  %p1043_p1 = scmp.lt.s32.totalorder %s1268_s13, %s1041_s29 }
  0x1d   : > { %910 = vmatprep.subr.bf16.mxu0 %v1010_v5  ;;  %p1037_p12 = scmp.ne.s32.totalorder %s1268_s13, %s1036_s26  ;;  %p1044_p2 = scmp.lt.s32.totalorder %s1042_s30, %s1036_s26 }
  0x1f   : > { %474 = vxpose.xlu0.c.b16.cont [2/4] (short) %v1015_v6, 128  ;;  %p1038_p13 = pnand %p1037_p12, %p1182_p4  ;;  %p1045_p3 = por %p1044_p2, %p1043_p1 }
  0x20   : > { %911 = vmatpush3.bf16.msra.mxu0 %v1010_v5 }
  0x21   : > { %912 = vmatprep.subr.bf16.mxu0 %v1011_v7  ;;  %p1039_p0 = pneg %p1038_p13 }
  0x23   : > { %475 = vxpose.xlu0.c.b16.cont [3/4] (short) %v1016_v8, 128  ;;  %p1046_p5 = pnand %p1045_p3, %p1039_p0 }
  0x24   : > { %913 = vmatpush3.bf16.msra.mxu0 %v1011_v7 }
  0x25   : > { %914 = vmatprep.subr.bf16.mxu0 %v1012_v9 }
  0x27   : > { %476 = vxpose.xlu0.c.b16.end [4/4] (short) %v1017_v10, 128 }
  0x28   : > { %915 = vmatpush3.bf16.msra.mxu0 %v1012_v9 }
  0x29   : > { %916 = vmatprep.subr.bf16.mxu0 %v1013_v11 }
  0x2c   : > { %917 = vmatpush3.bf16.msra.mxu0 %v1013_v11 }
  0x2f   : > { %919 = vmatmul.mubr.bf16.vlgmr.msra.gmra.mrb[0].mxu0 %v1015_v6 }
  0x30   : > { %922 = vmatprep.mubr.bf16.mxu0 %v1016_v8 }
  0x37   : > { %923 = vmatmul.mubr.bf16.gmra.mrb[4].mxu0 %v1017_v10 }
  0x81   : > { %v481_v12 = vpop.trf.xlu0 }
  0x82   : > { %934 = vmatprep.mubr.msk.bf16.mxu1 %vm489_vm0, %v481_v12  ;;  %v840_v12 = vld [vmem:[%s1315_s2] sm:$0xff]  }
  0x85   : > { %v482_v59 = vpop.trf.xlu0 }
  0x89   : > { %v483_v4 = vpop.trf.xlu0 }
  0x8d   : > { %v484_v7 = vpop.trf.xlu0 }
  0x91   : > { %v485_v8 = vpop.trf.xlu0 }
  0x95   : > { %v486_v9 = vpop.trf.xlu0 }
  0x99   : > { %v487_v10 = vpop.trf.xlu0 }
  0x9d   : > { %v488_v11 = vpop.trf.xlu0 }
 0x102   : > { %v920_v13 = vpop.f32.mrb[0].mxu0 }
 0x103   : > { %v388_v14 = vpop.f32.mrb[1].mxu0 }
 0x104   : > { %v921_v15 = vpop.f32.mrb[2].mxu0 }
 0x105   : > { %v391_v16 = vpop.f32.mrb[3].mxu0 }
 0x10a   : > { %v924_v17 = vpop.f32.mrb[4].mxu0 }
 0x10b   : > { %v421_v18 = vmax.f32 %v920_v13, %v924_v17  ;;  %v404_v19 = vpop.f32.mrb[5].mxu0 }
 0x10c   : > { %v419_v20 = vmax.f32 %v388_v14, %v404_v19  ;;  %v925_v21 = vpop.f32.mrb[6].mxu0 }
 0x10d   : > { %v422_v22 = vmax.f32 %v921_v15, %v925_v21  ;;  %v407_v23 = vpop.f32.mrb[7].mxu0 }
 0x10e   : > { %v420_v24 = vmax.f32 %v391_v16, %v407_v23 }
 0x10f   : > { %v424_v25 = vmax.f32 %v421_v18, %v422_v22 }
 0x110   : > { %v423_v26 = vmax.f32 %v419_v20, %v420_v24 }
 0x112   : > { %v425_v27 = vmax.f32 %v423_v26, %v424_v25 }
 0x114   : > { %v426_v28 = vrot.slane %v425_v27, 4 }
 0x116   : > { %v427_v29 = vmax.f32 %v425_v27, %v426_v28  ;;  %v873_v28 = vld [vmem:[%s1315_s2 + $0x18] sm:$0xff]  }
 0x118   : > { %v428_v30 = vrot.slane %v427_v29, 2 }
 0x11a   : > { %v429_v31 = vmax.f32 %v427_v29, %v428_v30 }
 0x11c   : > { %v430_v32 = vrot.slane %v429_v31, 1 }
 0x11e   : > { %v431_v33 = vmax.f32 %v429_v31, %v430_v32 }
 0x120   : > { %v432_v34 = vsub.f32 %v388_v14, %v431_v33  ;;  %v433_v35 = vsub.f32 %v391_v16, %v431_v33  ;;  %v434_v36 = vsub.f32 %v920_v13, %v431_v33  ;;  %v435_v37 = vsub.f32 %v921_v15, %v431_v33  ;;  %v871_v13 = vld [vmem:[%s1315_s2 + $0x8] sm:$0xff]  }
 0x121   : > { %v436_v38 = vsub.f32 %v404_v19, %v431_v33  ;;  %v437_v39 = vsub.f32 %v407_v23, %v431_v33  ;;  %v438_v40 = vsub.f32 %v924_v17, %v431_v33  ;;  %v439_v41 = vsub.f32 %v925_v21, %v431_v33  ;;  %v872_v21 = vld [vmem:[%s1315_s2 + $0x10] sm:$0xff]  }
 0x122   : > { %v440_v42 = vmul.f32 1.442695, %v432_v34  ;;  %v442_v43 = vmul.f32 1.442695, %v433_v35  ;;  %v444_v44 = vmul.f32 1.442695, %v434_v36  ;;  %v841_v15 = vunpack.c.l.bf16 %v840_v12 }
 0x123   : > { %v446_v45 = vmul.f32 1.442695, %v435_v37  ;;  %v448_v46 = vmul.f32 1.442695, %v436_v38  ;;  %v450_v47 = vmul.f32 1.442695, %v437_v39  ;;  %v842_v16 = vunpack.c.h.bf16 %v840_v12 }
 0x124   : > { %1018 = vpow2.f32 %v440_v42  ;;  %v452_v48 = vmul.f32 1.442695, %v438_v40  ;;  %v454_v49 = vmul.f32 1.442695, %v439_v41  ;;  %v845_v18 = vunpack.c.l.bf16 %v871_v13  ;;  %v874_v39 = vld [vmem:[%s1315_s2 + $0x20] sm:$0xff]  }
 0x125   : > { %1020 = vpow2.f32 %v442_v43  ;;  %v846_v23 = vunpack.c.h.bf16 %v871_v13  ;;  %v849_v27 = vunpack.c.l.bf16 %v872_v21  ;;  %v850_v32 = vunpack.c.h.bf16 %v872_v21 }
 0x126   : > { %1022 = vpow2.f32 %v444_v44  ;;  %v853_v34 = vunpack.c.l.bf16 %v873_v28  ;;  %v854_v41 = vunpack.c.h.bf16 %v873_v28 }
 0x127   : > { %1024 = vpow2.f32 %v446_v45 }
 0x128   : > { %1026 = vpow2.f32 %v448_v46  ;;  %v857_v46 = vunpack.c.l.bf16 %v874_v39 }
 0x129   : > { %1028 = vpow2.f32 %v450_v47  ;;  %v875_v47 = vld [vmem:[%s1315_s2 + $0x28] sm:$0xff]  }
 0x12a   : > { %1030 = vpow2.f32 %v452_v48 }
 0x12b   : > { %1032 = vpow2.f32 %v454_v49 }
 0x12e   : > { %v1019_v50 = vpop.eup %1018 }
 0x12f   : > { %v1021_v51 = vpop.eup %1020 }
 0x130   : > { %v1023_v52 = vpop.eup %1022  ;;  %v456_v53 = vadd.f32 %v1021_v51, %v1019_v50  ;;  %v469_v54 = vpack.c.bf16 %v1021_v51, %v1019_v50  ;;  %v858_v51 = vunpack.c.h.bf16 %v874_v39 }
 0x131   : > { %v1025_v55 = vpop.eup %1024 }
 0x132   : > { %v1027_v56 = vpop.eup %1026  ;;  %v457_v57 = vadd.f32 %v1023_v52, %v456_v53  ;;  %926 = vmatprep.subr.bf16.mxu1 %v469_v54  ;;  %v470_v58 = vpack.c.bf16 %v1025_v55, %v1023_v52 }
 0x133   : > { %v1029_v60 = vpop.eup %1028  ;;  %927 = vmatpush3.bf16.msra.mxu1 %v469_v54  ;;  %v861_v54 = vunpack.c.l.bf16 %v875_v47 }
 0x134   : > { %v1031_v61 = vpop.eup %1030  ;;  %v458_v62 = vadd.f32 %v1025_v55, %v457_v57  ;;  %928 = vmatprep.subr.bf16.mxu1 %v470_v58  ;;  %v471_v63 = vpack.c.bf16 %v1029_v60, %v1027_v56 }
 0x135   : > { %v1033_v0 = vpop.eup %1032 }
 0x136   : > { %v459_v1 = vadd.f32 %v1027_v56, %v458_v62  ;;  %v472_v2 = vpack.c.bf16 %v1033_v0, %v1031_v61 }
 0x137   : > { %929 = vmatpush3.bf16.msra.mxu1 %v470_v58 }
 0x138   : > { %v460_v3 = vadd.f32 %v1029_v60, %v459_v1  ;;  %930 = vmatprep.subr.bf16.mxu1 %v471_v63 }
 0x13a   : > { %v461_v5 = vadd.f32 %v1031_v61, %v460_v3  ;;  %v862_v61 = vunpack.c.h.bf16 %v875_v47  ;;  %v877_v3 = vld [vmem:[%s1315_s2 + $0x38] sm:$0xff]  }
 0x13b   : > { %931 = vmatpush3.bf16.msra.mxu1 %v471_v63 }
 0x13c   : > { %932 = vmatprep.subr.bf16.mxu1 %v472_v2  ;;  %v462_v6 = vadd.f32 %v1033_v0, %v461_v5 }
 0x13e   : > { %v463_v43 = vrot.slane %v462_v6, 4 }
 0x13f   : > { %933 = vmatpush3.bf16.msra.mxu1 %v472_v2 }
 0x140   : > { %v464_v53 = vadd.f32 %v463_v43, %v462_v6 }
 0x142   : > { %935 = vmatmul.mubr.msk.bf16.vlgmr.msra.gmra.mrb[0].mxu1 %vm489_vm0, %v482_v59  ;;  %v876_v59 = vld [vmem:[%s1315_s2 + $0x30] sm:$0xff]   ;;  %v465_v63 = vrot.slane %v464_v53, 2 }
 0x143   : > { %938 = vmatprep.mubr.msk.bf16.mxu1 %vm489_vm0, %v483_v4  ;;  %v865_v2 = vunpack.c.l.bf16 %v876_v59 }
 0x14a   : > { %939 = vmatmul.mubr.msk.bf16.gmra.mrb[4].mxu1 %vm489_vm0, %v484_v7  ;;  %v866_v7 = vunpack.c.h.bf16 %v876_v59 }
 0x14b   : > { %942 = vmatprep.mubr.msk.bf16.mxu1 %vm489_vm0, %v485_v8 }
 0x152   : > { %943 = vmatmul.mubr.msk.bf16.gmra.mrb[8].mxu1 %vm489_vm0, %v486_v9  ;;  %v466_v9 = vadd.f32 %v465_v63, %v464_v53 }
 0x153   : > { %946 = vmatprep.mubr.msk.bf16.mxu1 %vm489_vm0, %v487_v10  ;;  %v869_v10 = vunpack.c.l.bf16 %v877_v3 }
 0x15a   : > { %947 = vmatmul.mubr.msk.bf16.gmra.mrb[12].mxu1 %vm489_vm0, %v488_v11 }
 0x215   : > { %v936_v14 = vpop.f32.mrb[0].mxu1 }
 0x216   : > { %v548_v17 = vpop.f32.mrb[1].mxu1  ;;  %v645_v25 = vmul.f32 %v936_v14, %v845_v18  ;;  %v467_v18 = vrot.slane %v466_v9, 1 }
 0x217   : > { %v937_v19 = vpop.f32.mrb[2].mxu1  ;;  %v643_v22 = vmul.f32 %v841_v15, %v548_v17 }
 0x218   : > { %v551_v20 = vpop.f32.mrb[3].mxu1  ;;  %v646_v29 = vmul.f32 %v937_v19, %v846_v23  ;;  %v468_v23 = vadd.f32 %v467_v18, %v466_v9 }
 0x219   : > { %v644_v24 = vmul.f32 %v842_v16, %v551_v20  ;;  %v870_v16 = vunpack.c.h.bf16 %v877_v3 }
 0x21a   : > { %1034 = vrcp.f32 %v468_v23 }
 0x21b   : > { %v659_v26 = vadd.f32 %v644_v24, %v643_v22 }
 0x21d   : > { %v660_v30 = vadd.f32 %v659_v26, %v645_v25  ;;  %v940_v31 = vpop.f32.mrb[4].mxu1 }
 0x21e   : > { %v564_v33 = vpop.f32.mrb[5].mxu1  ;;  %v649_v44 = vmul.f32 %v940_v31, %v853_v34 }
 0x21f   : > { %v647_v35 = vmul.f32 %v849_v27, %v564_v33  ;;  %v661_v36 = vadd.f32 %v660_v30, %v646_v29  ;;  %v941_v37 = vpop.f32.mrb[6].mxu1 }
 0x220   : > { %v567_v38 = vpop.f32.mrb[7].mxu1  ;;  %v650_v48 = vmul.f32 %v941_v37, %v854_v41 }
 0x221   : > { %v662_v40 = vadd.f32 %v661_v36, %v647_v35  ;;  %v648_v42 = vmul.f32 %v850_v32, %v567_v38  ;;  %v682_v32 = vld [vmem:[%s1316_s3] sm:$0x1] }
 0x223   : > { %v663_v45 = vadd.f32 %v662_v40, %v648_v42 }
 0x224   : > { %v1035_v31 = vpop.eup %1034 }
 0x225   : > { %v664_v49 = vadd.f32 %v663_v45, %v649_v44  ;;  %v944_v50 = vpop.f32.mrb[8].mxu1 }
 0x226   : > { %v580_v52 = vpop.f32.mrb[9].mxu1  ;;  %v653_v0 = vmul.f32 %v944_v50, %v861_v54 }
 0x227   : > { %v651_v55 = vmul.f32 %v857_v46, %v580_v52  ;;  %v665_v56 = vadd.f32 %v664_v49, %v650_v48  ;;  %v945_v57 = vpop.f32.mrb[10].mxu1 }
 0x228   : > { %v583_v58 = vpop.f32.mrb[11].mxu1  ;;  %v654_v4 = vmul.f32 %v945_v57, %v862_v61 }
 0x229   : > { %v666_v60 = vadd.f32 %v665_v56, %v651_v55  ;;  %v652_v62 = vmul.f32 %v858_v51, %v583_v58 }
 0x22b   : > { %v667_v1 = vadd.f32 %v666_v60, %v652_v62 }
 0x22d   : > { %v668_v5 = vadd.f32 %v667_v1, %v653_v0  ;;  %v948_v6 = vpop.f32.mrb[12].mxu1 }
 0x22e   : > { %v596_v8 = vpop.f32.mrb[13].mxu1  ;;  %v657_v19 = vmul.f32 %v948_v6, %v869_v10 }
 0x22f   : > { %v655_v11 = vmul.f32 %v865_v2, %v596_v8  ;;  %v669_v12 = vadd.f32 %v668_v5, %v654_v4  ;;  %v949_v13 = vpop.f32.mrb[14].mxu1 }
 0x230   : > { %v599_v14 = vpop.f32.mrb[15].mxu1  ;;  %v658_v21 = vmul.f32 %v949_v13, %v870_v16 }
 0x231   : > { %v670_v15 = vadd.f32 %v669_v12, %v655_v11  ;;  %v656_v17 = vmul.f32 %v866_v7, %v599_v14 }
 0x233   : > { %v671_v20 = vadd.f32 %v670_v15, %v656_v17 }
 0x235   : > { %v672_v22 = vadd.f32 %v671_v20, %v657_v19 }
 0x237   : > { %v673_v24 = vadd.f32 %v672_v22, %v658_v21 }
 0x239   : > { %v674_v25 = vrot.slane %v673_v24, 4 }
 0x23b   : > { %v675_v26 = vadd.f32 %v674_v25, %v673_v24 }
 0x23d   : > { %v676_v27 = vrot.slane %v675_v26, 2 }
 0x23f   : > { %v677_v28 = vadd.f32 %v676_v27, %v675_v26 }
 0x241   : > { %v678_v29 = vrot.slane %v677_v28, 1 }
 0x243   : > { %v679_v30 = vadd.f32 %v678_v29, %v677_v28 }
 0x245   : > { %v681_v33 = vmul.f32 %v1035_v31, %v679_v30 }
 0x247   : > { %v683_v34 = vadd.f32 %v682_v32, %v681_v33 }
 0x249   : > { %684 = vst [vmem:[%s240_s12] sm:$0x1] %v683_v34 }
 0x24a   : > { %1049 = shalt.err (!%p1046_p5)
}
 0x24b   : > { %s1050_s5 = scalar_lea.hbm %s1266_s22, 16  ;;  %s1054_s8 = scalar_lea.hbm %s1317_s4, 32 }
 0x24c   : > { %p1051_p6 = scmp.ne.s32.totalorder %s1266_s22, %s1050_s5  ;;  %p1055_p10 = scmp.lt.u32.totalorder %s1266_s22, %s1317_s4 }
 0x24d   : > { %p1056_p11 = scmp.lt.u32.totalorder %s1054_s8, %s1050_s5  ;;  %p1058_p13 = scmp.lt.u32.totalorder %s1050_s5, %s1266_s22 }
 0x24e   : > { %p1052_p7 = pnand %p1051_p6, %p1182_p4 }
 0x24f   : > { %p1057_p12 = por %p1056_p11, %p1055_p10 }
 0x250   : > { %p1053_p9 = pneg %p1052_p7 }
 0x251   : > { %p1059_p0 = por %p1058_p13, %p1057_p12 }
 0x253   : > { %p1060_p1 = pnand %p1059_p0, %p1053_p9 }
 0x255   : > { %1063 = shalt.err (!%p1060_p1)
}
 0x256   : > { %950 = dma.vmem_to_hbm [thread:$0]  (%p1182_p4), %s1268_s13, 16, %s1266_s22, %s686_s24  }
 0x257 PF: > { %p956_p2 = scmp.ge.s32.totalorder %s1114_s20, 2  ;;  %s711_s11 = sand.u32 1, %s1094_s15  }
 0x258   : > { %s712_s12 = scalar_lea.sflag [#allocation3], %s711_s11 }
 0x259   : > { %p953_p3 = pnand %p956_p2, %p1189_p8 }
 0x25b   : > { %1089 = dma.done.wait (!%p953_p3), %s712_s12, 16  }
 0x25c   : > { %1091 = vsyncadd (!%p953_p3), %s712_s12, 4294967280  ;;  %s17_s20 = sadd.s32 1, %s1114_s20   ;;  %s1320_s15 = smov %s1098_s16 }
 0x25d   : > { %p14_p5 = scmp.ge.s32.totalorder %s17_s20, 4   ;;  %s1321_s16 = smov %s1102_s17 }
 0x25e   : > { %s1322_s17 = smov %s1195_s28  ;;  %s1323_s18 = smov %s1110_s19 }
 0x25f   : > { %s1324_s19 = smov %s1326_s23  ;;  %16 = sbr.rel (!%p14_p5) target bundleno = 4 (0x4), region = 80 }
 0x266   :  { %716 = vsyncpa [#allocation3], 1 }
 0x267   :  { %718 = vsyncpa [#allocation3 + $0x1], 1 }

// kernel: _lambda_.3
= control target key start
LH: loop header
LB: loop body
LE: loop exit
PB: predicated region body
PF: predicated region fallthrough
CT: control target
= control target key end

     0   :  { %s2221_s27 = smov 0   ;;  %s2223_s28 = smov 0   ;;  %s2575_s0 = inlined_call_operand.vmem [shape: bf16[2,64,128], index: 0, kind: input, shape index: {}, may-alias: {0,1}]   ;;  %s2576_s1 = inlined_call_operand.vmem [shape: bf16[2,64,128], index: 1, kind: input, shape index: {}, may-alias: {0,1}]   ;;  %s2577_s2 = inlined_call_operand.vmem [shape: bf16[384,128], index: 2, kind: input, shape index: {}]   ;;  %s2578_s3 = inlined_call_operand.vmem [shape: f32[1,128], index: 3, kind: input, shape index: {}, may-alias: {3,5,7}]   ;;  %s2579_s4 = inlined_call_operand.vmem [shape: bf16[384,128], index: 4, kind: input, shape index: {}]   ;;  %s2580_s5 = inlined_call_operand.vmem [shape: f32[1,128], index: 5, kind: input, shape index: {}, may-alias: {3,5,7}]   ;;  %s2581_s6 = inlined_call_operand.vmem [shape: bf16[128,128], index: 6, kind: input, shape index: {}]   ;;  %s2582_s7 = inlined_call_operand.vmem [shape: f32[1,128], index: 7, kind: input, shape index: {}, may-alias: {3,5,7}]   ;;  %s2583_s8 = inlined_call_operand.vmem [shape: bf16[2,64,128], index: 8, kind: output, shape index: {}]  }
   0x1   :  { %s2225_s29 = smov 0   ;;  %s2227_s30 = smov 0  }
   0x2   :  { %s2229_s9 = smov 0  }
   0x3 LB: > { %s27_s10 = sadd.s32 1, %s2162_s29  ;;  %s30_s11 = sadd.s32 1, %s2166_s30  ;;  %s2170_s9 = sphi %s2229_s9, %s18_s9   ;;  %s2166_s30 = sphi %s2227_s30, %s2591_s30   ;;  %s2162_s29 = sphi %s2225_s29, %s2590_s29   ;;  %s2158_s28 = sphi %s2223_s28, %s2589_s28   ;;  %s2154_s27 = sphi %s2221_s27, %s2588_s27  }
   0x4   : > { %p28_p0 = scmp.ge.s32.totalorder %s27_s10, 2  ;;  %p1686_p1 = scmp.ge.s32.totalorder %s2170_s9, 1 }
   0x5   : > { %p312_p2 = scmp.lt.s32.totalorder %s2170_s9, 5 }
   0x6   : > { %s2593_s10 = smov (%p28_p0, %s27_s10), 0  ;;  %s2595_s11 = smov (!%p28_p0, %s30_s11), %s2166_s30 }
   0x7   : > { %p313_p3 = pnand %p1686_p1, %p312_p2  ;;  %p32_p4 = scmp.ge.s32.totalorder %s2595_s11, 2 }
   0x8   : > { %s1687_s12 = sshll.u32 (!%p313_p3), %s2154_s27, 2  ;;  %p367_p5 = scmp.lt.s32.totalorder (!%p313_p3), %s2158_s28, 1 }
   0x9   : > { %s2597_s11 = smov (%p32_p4, %s2595_s11), 0  ;;  %316 = sbr.rel (%p313_p3) target bundleno = 600 (0x258), region = 52 }
   0xa   : > { %p369_p6 = scmp.lt.s32.totalorder (!%p313_p3), %s1687_s12, 7  ;;  %s1690_s13 = sadd.s32 (!%p313_p3), 4294967295, %s2154_s27 }
   0xb   : > { %p377_p7 = scmp.gt.s32.totalorder (!%p313_p3), %s1690_s13, 0  ;;  %p1697_p9 = scmp.ne.s32.totalorder (!%p313_p3), %s2154_s27, 0 }
  0x10   : > { %s2599_s28 = smov (!%p367_p5, %s2158_s28), 1  ;;  %s2601_s12 = smov (!%p369_p6, %s1687_s12), 7 }
  0x11   : > { %s1688_s14 = sshll.u32 %s2599_s28, 3  ;;  %s2603_s13 = smov (!%p377_p7, %s1690_s13), 0  ;;  %v2172_v4 = vmov (!%p1697_p9), 0  }
  0x12   : > { %s372_s15 = sadd.s32 %s1688_s14, %s2601_s12  ;;  %s1691_s23 = sshll.u32 %s2603_s13, 2  ;;  %411 = vst [vmem:[#allocation2] sm:$0xff] (!%p1697_p9), %v2172_v4 }
  0x13   : > { %s1689_s16 = sshll.u32 %s372_s15, 2  ;;  %p382_p8 = scmp.lt.s32.totalorder %s1691_s23, 7 }
  0x14   : > { %s374_s19 = scalar_lea.vmem %s2575_s0, %s1689_s16  ;;  %s2261_s22 = scalar_lea.vmem %s2583_s8, %s1689_s16 }
  0x15   : > { %v2263_v0 = vld [vmem:[%s374_s19] sm:$0xf]  ;;  %v2265_v1 = vld [vmem:[%s374_s19 + $0x4] sm:$0xf]  ;;  %v405_v2 = vld [vmem:[%s374_s19 + $0x8] sm:$0xf] }
  0x16   : > { %v406_v3 = vld [vmem:[%s374_s19 + $0xc] sm:$0xf]  ;;  %s2605_s23 = smov (!%p382_p8, %s1691_s23), 7  ;;  %410 = sbr.rel (%p1697_p9) target bundleno = 29 (0x1d), region = 56 }
  0x17   : > { %s385_s24 = sadd.s32 %s1688_s14, %s2605_s23 }
  0x18   : > { %s1693_s25 = sshll.u32 %s385_s24, 2 }
  0x19   : > { %s387_s12 = scalar_lea.vmem %s2576_s1, %s1693_s25 }
  0x1d PF: > { %p1698_p10 = scmp.le.s32.totalorder %s2154_s27, 0 }
  0x1e   : > { %v2045_v5 = vld [vmem:[%s387_s12 + $0x8] sm:$0xff] (!%p1698_p10)  }
  0x1f   : > { %415 = sbr.rel (%p1698_p10) target bundleno = 38 (0x26), region = 60  ;;  %424 = vst [vmem:[#allocation2] sm:$0xff] (!%p1698_p10), %v2045_v5 }
  0x26 PF: > { %v2046_v6 = vld [vmem:[%s2577_s2 + $0x40] sm:$0xff]   ;;  %v1700_v7 = vcombine.low %v2263_v0, %v2265_v1  ;;  %v2279_v8 = vcombine.low %v405_v2, %v406_v3  ;;  %v2173_v10 = vmov 0.0   ;;  %v2290_v12 = vcombine.low %v2263_v0, %v2263_v0  ;;  %v2049_v15 = vld [vmem:[%s2577_s2 + $0x48] sm:$0xff]   ;;  %v2052_v19 = vld [vmem:[%s2577_s2 + $0x50] sm:$0xff]  }
  0x27   : > { %v2047_v9 = vld [vmem:[%s2577_s2] sm:$0xff]   ;;  %1933 = vmatprep.subr.bf16.mxu1 %v2173_v10  ;;  %1840 = vmatprep.subr.bf16.mxu0 %v2046_v6  ;;  %v2294_v13 = vcombine.low %v2265_v1, %v2265_v1  ;;  %v2297_v14 = vcombine.low %v405_v2, %v405_v2  ;;  %v2302_v16 = vcombine.low %v406_v3, %v406_v3  ;;  %v2050_v17 = vld [vmem:[%s2577_s2 + $0x8] sm:$0xff]   ;;  %vm2174_vm0 = vmmov 0   ;;  %v2053_v20 = vld [vmem:[%s2577_s2 + $0x10] sm:$0xff]  }
  0x28   : > { %v2048_v11 = vld [vmem:[%s2577_s2 + $0x80] sm:$0xff]   ;;  %438 = vst [vmem:[#allocation2 + $0x10] sm:$0xff] %v2279_v8  ;;  %1841 = vmatpush3.bf16.msra.mxu0 %v2047_v9  ;;  %1949 = vmatprep.mubr.msk.bf16.mxu1 %vm2174_vm0, %v2173_v10  ;;  %588 = vst [vmem:[#allocation4 + $0x14] sm:$0xf] %v2290_v12  ;;  %v2051_v18 = vld [vmem:[%s2577_s2 + $0x88] sm:$0xff]   ;;  %v465_v22 = vrot.slane %v2290_v12, 7 }
  0x29   : > { %1934 = vmatpush3.bf16.msra.mxu1 %v2048_v11  ;;  %589 = vst [vmem:[#allocation4 + $0x20] sm:$0xf] %v2294_v13  ;;  %590 = vst [vmem:[#allocation4 + $0x2c] sm:$0xf] %v2297_v14  ;;  %1842 = vmatprep.subr.bf16.mxu0 %v2049_v15  ;;  %v2054_v21 = vld [vmem:[%s2577_s2 + $0x90] sm:$0xff]   ;;  %v2055_v23 = vld [vmem:[%s2577_s2 + $0x58] sm:$0xff]  }
  0x2a   : > { %1935 = vmatprep.subr.bf16.mxu1 %v2173_v10  ;;  %591 = vst [vmem:[#allocation4 + $0x38] sm:$0xf] %v2302_v16  ;;  %v522_v24 = vshrl.u32 %v2290_v12, 16  ;;  %v2056_v25 = vld [vmem:[%s2577_s2 + $0x18] sm:$0xff]   ;;  %v468_v26 = vrot.slane %v2294_v13, 7  ;;  %v467_v28 = vrot.slane %v465_v22, 4 }
  0x2b   : > { %v2057_v27 = vld [vmem:[%s2577_s2 + $0x98] sm:$0xff]   ;;  %v2058_v29 = vld [vmem:[%s2577_s2 + $0x60] sm:$0xff]   ;;  %v531_v30 = vshrl.u32 %v2294_v13, 16  ;;  %vm457_vm1 = vcmask 1040384   ;;  %vm458_vm2 = vcmask 1044484   ;;  %v525_v32 = vshll.u32 %v2290_v12, 16 }
  0x2c   : > { %1843 = vmatpush3.bf16.msra.mxu0 %v2050_v17  ;;  %v2346_v31 = vrot.slane %v522_v24, 7  ;;  %v2059_v33 = vld [vmem:[%s2577_s2 + $0x20] sm:$0xff]   ;;  %v540_v36 = vshrl.u32 %v2297_v14, 16  ;;  %v2061_v37 = vld [vmem:[%s2577_s2 + $0x68] sm:$0xff]   ;;  %v534_v40 = vshll.u32 %v2294_v13, 16  ;;  %v543_v44 = vshll.u32 %v2297_v14, 16  ;;  %vm2386_vm4 = vmor %vm457_vm1, %vm458_vm2 }
  0x2d   : > { %1936 = vmatpush3.bf16.msra.mxu1 %v2051_v18  ;;  %1844 = vmatprep.subr.bf16.mxu0 %v2052_v19  ;;  %v533_v34 = vrot.slane %v531_v30, 7  ;;  %v2060_v35 = vld [vmem:[%s2577_s2 + $0xa0] sm:$0xff]   ;;  %v2062_v39 = vld [vmem:[%s2577_s2 + $0x28] sm:$0xff]   ;;  %v2064_v45 = vld [vmem:[%s2577_s2 + $0x70] sm:$0xff]   ;;  %v549_v46 = vshrl.u32 %v2302_v16, 16  ;;  %v552_v49 = vshll.u32 %v2302_v16, 16  ;;  %v469_v63 = vsel %vm2386_vm4, %v467_v28, %v468_v26 }
  0x2e   : > { %1937 = vmatprep.subr.bf16.mxu1 %v2173_v10  ;;  %v529_v38 = vrot.slane %v2346_v31, 4  ;;  %v2063_v41 = vld [vmem:[%s2577_s2 + $0xa8] sm:$0xff]   ;;  %v542_v43 = vrot.slane %v540_v36, 7  ;;  %v2065_v47 = vld [vmem:[%s2577_s2 + $0x30] sm:$0xff]   ;;  %v2067_v51 = vld [vmem:[%s2577_s2 + $0x78] sm:$0xff]   ;;  %v470_v2 = vrot.slane %v468_v26, 4  ;;  %v527_v26 = vor.u32 %v525_v32, %v2346_v31 }
  0x2f   : > { %v538_v42 = vrot.slane %v533_v34, 4  ;;  %v2066_v50 = vld [vmem:[%s2577_s2 + $0xb0] sm:$0xff]   ;;  %v536_v52 = vor.u32 %v534_v40, %v533_v34  ;;  %v551_v53 = vrot.slane %v549_v46, 7  ;;  %v439_v54 = vld [vmem:[#allocation2] sm:$0xf8]  ;;  %v2068_v4 = vld [vmem:[%s2577_s2 + $0x38] sm:$0xff]  }
  0x30   : > { %1845 = vmatpush3.bf16.msra.mxu0 %v2053_v20  ;;  %v547_v48 = vrot.slane %v542_v43, 4  ;;  %v486_v55 = vld [vmem:[#allocation2] sm:$0xf8]  ;;  %vm504_vm3 = vsmask.f32 256  ;;  %v545_v56 = vor.u32 %v543_v44, %v542_v43  ;;  %v1702_v57 = vcombine.low %v439_v54, %v439_v54 }
  0x31   : > { %1938 = vmatpush3.bf16.msra.mxu1 %v2054_v21  ;;  %1846 = vmatprep.subr.bf16.mxu0 %v2055_v23  ;;  %v1703_v58 = vcombine.high %v439_v54, %v439_v54  ;;  %v1709_v60 = vcombine.low %v486_v55, %v486_v55  ;;  %vm505_vm5 = vsmask.f32 4368  ;;  %v1710_v61 = vcombine.high %v486_v55, %v486_v55  ;;  %v2077_v11 = vld [vmem:[#allocation2 + $0x4] ss:$0 sps:$4 sm:$0xff]   ;;  %v441_v16 = vld [vmem:[#allocation2 + $0x10] sm:$0x7f] }
  0x32   : > { %1939 = vmatprep.subr.bf16.mxu1 %v2173_v10  ;;  %vm2391_vm6 = vmor %vm504_vm3, %vm505_vm5  ;;  %v554_v3 = vor.u32 %v552_v49, %v551_v53  ;;  %v1708_v5 = vrot.slane %v1702_v57, 11  ;;  %483 = vst [vmem:[#allocation4 + $0x18] sm:$0xf] %v469_v63  ;;  %v2076_v21 = vld [vmem:[%s2577_s2 + $0xb8] sm:$0xff]   ;;  %v1706_v23 = vcombine.low %v441_v16, %v441_v16  ;;  %v2087_v43 = vld [vmem:[#allocation4 + $0x38] ss:$0 sps:$4 sm:$0xff]  }
  0x33   : > { %v462_v6 = vrot.slane %v1703_v58, 7  ;;  %v508_v9 = vshrl.u32 %v1709_v60, 16  ;;  %v537_v13 = vsel %vm2391_vm6, %v529_v38, %v536_v52  ;;  %v513_v14 = vshrl.u32 %v1710_v61, 16  ;;  %587 = vst [vmem:[#allocation4 + $0x8] sm:$0xf] %v2077_v11 }
  0x34   : > { %1847 = vmatpush3.bf16.msra.mxu0 %v2056_v25  ;;  %v516_v15 = vshll.u32 %v1710_v61, 16  ;;  %v546_v17 = vsel %vm2391_vm6, %v538_v42, %v545_v56  ;;  %563 = vst [vmem:[#allocation4 + $0x1c] sm:$0xf] %v537_v13  ;;  %v555_v18 = vsel %vm2391_vm6, %v547_v48, %v554_v3 }
  0x35   : > { %1940 = vmatpush3.bf16.msra.mxu1 %v2057_v27  ;;  %1848 = vmatprep.subr.bf16.mxu0 %v2058_v29  ;;  %v463_v19 = vsel %vm2386_vm4, %v1708_v5, %v462_v6  ;;  %v464_v20 = vrot.slane %v462_v6, 4  ;;  %564 = vst [vmem:[#allocation4 + $0x28] sm:$0xf] %v546_v17  ;;  %565 = vst [vmem:[#allocation4 + $0x34] sm:$0xf] %v555_v18  ;;  %v1715_v24 = vrot.slane %v508_v9, 11 }
  0x36   : > { %1941 = vmatprep.subr.bf16.mxu1 %v2173_v10  ;;  %481 = vst [vmem:[#allocation4] sm:$0xf] %v463_v19  ;;  %v515_v25 = vrot.slane %v513_v14, 7  ;;  %v1707_v27 = vcombine.high %v441_v16, %v441_v16  ;;  %v471_v29 = vrot.slane %v1706_v23, 7 }
  0x37   : > { %v466_v28 = vsel %vm2386_vm4, %v464_v20, %v465_v22 }
  0x38   : > { %1849 = vmatpush3.bf16.msra.mxu0 %v2059_v33  ;;  %482 = vst [vmem:[#allocation4 + $0xc] sm:$0xf] %v466_v28  ;;  %v518_v30 = vor.u32 %v516_v15, %v515_v25  ;;  %v520_v33 = vrot.slane %v515_v25, 4  ;;  %v474_v34 = vrot.slane %v1707_v27, 7  ;;  %v473_v36 = vrot.slane %v471_v29, 4 }
  0x39   : > { %1942 = vmatpush3.bf16.msra.mxu1 %v2060_v35  ;;  %1850 = vmatprep.subr.bf16.mxu0 %v2061_v37  ;;  %v472_v35 = vsel %vm2386_vm4, %v470_v2, %v471_v29  ;;  %v2083_v37 = vld [vmem:[#allocation4 + $0x20] ss:$12 sps:$4 sm:$0xff]  }
  0x3a   : > { %1943 = vmatprep.subr.bf16.mxu1 %v2173_v10  ;;  %v519_v31 = vsel %vm2391_vm6, %v1715_v24, %v518_v30  ;;  %v528_v12 = vsel %vm2391_vm6, %v520_v33, %v527_v26  ;;  %484 = vst [vmem:[#allocation4 + $0x24] sm:$0xf] %v472_v35  ;;  %v475_v22 = vsel %vm2386_vm4, %v473_v36, %v474_v34  ;;  %v2078_v32 = vld [vmem:[#allocation4 + $0x8] ss:$12 sps:$4 sm:$0xff]  }
  0x3b   : > { %561 = vst [vmem:[#allocation4 + $0x4] sm:$0xf] %v519_v31  ;;  %562 = vst [vmem:[#allocation4 + $0x10] sm:$0xf] %v528_v12 }
  0x3c   : > { %1851 = vmatpush3.bf16.msra.mxu0 %v2062_v39  ;;  %485 = vst [vmem:[#allocation4 + $0x30] sm:$0xf] %v475_v22  ;;  %v2080_v40 = vld [vmem:[#allocation4 + $0x1c] ss:$12 sps:$4 sm:$0xff]  }
  0x3d   : > { %1944 = vmatpush3.bf16.msra.mxu1 %v2063_v41  ;;  %1852 = vmatprep.subr.bf16.mxu0 %v2064_v45 }
  0x3e   : > { %1945 = vmatprep.subr.bf16.mxu1 %v2173_v10 }
  0x3f   : > { %v2073_v38 = vld [vmem:[#allocation4] ss:$12 sps:$4 sm:$0xff]  }
  0x40   : > { %1853 = vmatpush3.bf16.msra.mxu0 %v2065_v47 }
  0x41   : > { %1946 = vmatpush3.bf16.msra.mxu1 %v2066_v50  ;;  %1854 = vmatprep.subr.bf16.mxu0 %v2067_v51  ;;  %v2082_v42 = vld [vmem:[#allocation4 + $0x18] ss:$12 sps:$4 sm:$0xff]  }
  0x42   : > { %1947 = vmatprep.subr.bf16.mxu1 %v2173_v10  ;;  %v2075_v39 = vld [vmem:[#allocation4 + $0x4] ss:$12 sps:$4 sm:$0xff]  }
  0x43   : > { %876 = vmatprep.mubr.bf16.mxu0 %v2075_v39  ;;  %v600_v41 = vld [vmem:[#allocation4 + $0x30] sm:$0xff] }
  0x44   : > { %1855 = vmatpush3.bf16.msra.mxu0 %v2068_v4  ;;  %v1729_v44 = vcombine.high %v600_v41, %v600_v41  ;;  %v1728_v45 = vcombine.low %v600_v41, %v600_v41 }
  0x45   : > { %1948 = vmatpush3.bf16.msra.mxu1 %v2076_v21 }
  0x47   : > { %877 = vmatmul.mubr.bf16.vlgmr.msra.gmra.mrb[0].mxu0 %v2073_v38 }
  0x48   : > { %1950 = vmatmul.mubr.bf16.vlgmr.msra.gmra.mrb[0].mxu1 %v2078_v32  ;;  %884 = vmatprep.mubr.bf16.mxu0 %v2080_v40  ;;  %v2175_v32 = vmov (!%p1697_p9), 0  }
  0x49   : > { %1953 = vmatprep.mubr.msk.bf16.mxu1 %vm2174_vm0, %v2173_v10 }
  0x4f   : > { %885 = vmatmul.mubr.bf16.gmra.mrb[4].mxu0 %v2082_v42 }
  0x50   : > { %1954 = vmatmul.mubr.bf16.gmra.mrb[4].mxu1 %v2083_v37  ;;  %892 = vmatprep.mubr.bf16.mxu0 %v1729_v44 }
  0x51   : > { %1957 = vmatprep.mubr.msk.bf16.mxu1 %vm2174_vm0, %v2173_v10  ;;  %v1721_v10 = vld [vmem:[%s2578_s3] ss:$0 sm:$0xff] }
  0x57   : > { %893 = vmatmul.mubr.bf16.gmra.mrb[8].mxu0 %v1728_v45 }
  0x58   : > { %1958 = vmatmul.mubr.bf16.gmra.mrb[8].mxu1 %v2087_v43 }
 0x11a   : > { %v1856_v50 = vpop.f32.mrb[0].mxu0 }
 0x11b   : > { %v934_v46 = vpop.f32.mrb[0].mxu1  ;;  %v1857_v52 = vpop.f32.mrb[1].mxu0 }
 0x11c   : > { %v1951_v47 = vpop.f32.mrb[1].mxu1  ;;  %v1858_v54 = vadd.f32 %v1857_v52, %v1856_v50  ;;  %v1859_v55 = vpop.f32.mrb[2].mxu0 }
 0x11d   : > { %v937_v48 = vpop.f32.mrb[2].mxu1  ;;  %v1860_v57 = vpop.f32.mrb[3].mxu0 }
 0x11e   : > { %v1952_v49 = vpop.f32.mrb[3].mxu1  ;;  %v879_v60 = vadd.f32 %v1858_v54, %v1721_v10  ;;  %v1861_v61 = vadd.f32 %v1860_v57, %v1859_v55 }
 0x120   : > { %v935_v63 = vadd.f32 %v934_v46, %v879_v60  ;;  %v882_v2 = vadd.f32 %v1861_v61, %v1721_v10 }
 0x122   : > { %v938_v3 = vadd.f32 %v937_v48, %v882_v2  ;;  %v1862_v4 = vpop.f32.mrb[4].mxu0  ;;  %v956_v11 = vmax.f32 %v935_v63, 0.0 }
 0x123   : > { %v942_v51 = vpop.f32.mrb[4].mxu1  ;;  %v1863_v6 = vpop.f32.mrb[5].mxu0 }
 0x124   : > { %v1955_v53 = vpop.f32.mrb[5].mxu1  ;;  %v957_v13 = vmax.f32 %v938_v3, 0.0  ;;  %v1864_v14 = vadd.f32 %v1863_v6, %v1862_v4  ;;  %v1865_v15 = vpop.f32.mrb[6].mxu0 }
 0x125   : > { %v945_v56 = vpop.f32.mrb[6].mxu1  ;;  %v1866_v17 = vpop.f32.mrb[7].mxu0 }
 0x126   : > { %v1956_v58 = vpop.f32.mrb[7].mxu1  ;;  %v1821_v19 = vpack.c.bf16 %v957_v13, %v956_v11  ;;  %v887_v20 = vadd.f32 %v1864_v14, %v1721_v10  ;;  %v1867_v21 = vadd.f32 %v1866_v17, %v1865_v15 }
 0x128   : > { %1822 = vst [vmem:[#allocation3] sm:$0xff] %v1821_v19   ;;  %v943_v23 = vadd.f32 %v942_v51, %v887_v20  ;;  %v890_v24 = vadd.f32 %v1867_v21, %v1721_v10 }
 0x129   : > { %990 = vst [vmem:[#allocation3] sm:$0xf] (!%p1697_p9), %v2175_v32 }
 0x12a   : > { %v946_v25 = vadd.f32 %v945_v56, %v890_v24  ;;  %v1868_v26 = vpop.f32.mrb[8].mxu0  ;;  %v958_v28 = vmax.f32 %v943_v23, 0.0 }
 0x12b   : > { %v950_v5 = vpop.f32.mrb[8].mxu1  ;;  %v1869_v27 = vpop.f32.mrb[9].mxu0 }
 0x12c   : > { %v1959_v9 = vpop.f32.mrb[9].mxu1  ;;  %v959_v29 = vmax.f32 %v946_v25, 0.0  ;;  %v1870_v30 = vadd.f32 %v1869_v27, %v1868_v26  ;;  %v1871_v33 = vpop.f32.mrb[10].mxu0 }
 0x12d   : > { %v953_v16 = vpop.f32.mrb[10].mxu1  ;;  %v1872_v34 = vpop.f32.mrb[11].mxu0 }
 0x12e   : > { %v1960_v18 = vpop.f32.mrb[11].mxu1  ;;  %v1826_v35 = vpack.c.bf16 %v959_v29, %v958_v28  ;;  %v895_v36 = vadd.f32 %v1870_v30, %v1721_v10 }
 0x130   : > { %1838 = vst [vmem:[#allocation3 + $0x8] sm:$0xff] %v1826_v35   ;;  %v951_v31 = vadd.f32 %v950_v5, %v895_v36  ;;  %989 = sbr.rel (%p1697_p9) target bundleno = 311 (0x137), region = 64 }
 0x132   : > { %v960_v12 = vmax.f32 %v951_v31, 0.0 }
 0x134   : > { %v1813_v22 = vpack.c.bf16 %v960_v12, %v960_v12 }
 0x136   : > { %986 = vst [vmem:[#allocation3 + $0x10] sm:$0xf] %v1813_v22 }
 0x137 PF: > { %v2088_v37 = vld [vmem:[%s2579_s4 + $0x40] sm:$0xff]   ;;  %v2090_v39 = vld [vmem:[%s2579_s4 + $0x48] sm:$0xff]   ;;  %v2093_v42 = vld [vmem:[%s2579_s4 + $0x50] sm:$0xff]  }
 0x138   : > { %v2089_v38 = vld [vmem:[%s2579_s4] sm:$0xff]   ;;  %1885 = vmatprep.subr.bf16.mxu0 %v2088_v37  ;;  %v2092_v41 = vld [vmem:[%s2579_s4 + $0x8] sm:$0xff]   ;;  %v2095_v44 = vld [vmem:[%s2579_s4 + $0x10] sm:$0xff]  }
 0x139   : > { %1886 = vmatpush3.bf16.msra.mxu0 %v2089_v38  ;;  %v2091_v40 = vld [vmem:[%s2579_s4 + $0x80] sm:$0xff]   ;;  %v2094_v43 = vld [vmem:[%s2579_s4 + $0x88] sm:$0xff]   ;;  %v2096_v45 = vld [vmem:[%s2579_s4 + $0x58] sm:$0xff]  }
 0x13a   : > { %1887 = vmatprep.subr.bf16.mxu0 %v2090_v39  ;;  %1961 = vmatprep.subr.bf16.mxu1 %v2091_v40  ;;  %v2097_v46 = vld [vmem:[%s2579_s4 + $0x90] sm:$0xff]   ;;  %v2098_v47 = vld [vmem:[%s2579_s4 + $0x18] sm:$0xff]   ;;  %v2099_v48 = vld [vmem:[%s2579_s4 + $0x60] sm:$0xff]  }
 0x13b   : > { %1962 = vmatpush3.bf16.msra.mxu1 %v2091_v40  ;;  %v2100_v49 = vld [vmem:[%s2579_s4 + $0x98] sm:$0xff]   ;;  %v2101_v50 = vld [vmem:[%s2579_s4 + $0x20] sm:$0xff]   ;;  %v2102_v52 = vld [vmem:[%s2579_s4 + $0x68] sm:$0xff]  }
 0x13c   : > { %1963 = vmatprep.subr.bf16.mxu1 %v2094_v43  ;;  %v2103_v51 = vld [vmem:[%s2579_s4 + $0xa0] sm:$0xff]   ;;  %v2104_v10 = vld [vmem:[%s2579_s4 + $0x28] sm:$0xff]   ;;  %v2105_v54 = vld [vmem:[%s2579_s4 + $0x70] sm:$0xff]  }
 0x13d   : > { %1888 = vmatpush3.bf16.msra.mxu0 %v2092_v41  ;;  %v2106_v53 = vld [vmem:[%s2579_s4 + $0xa8] sm:$0xff]   ;;  %v2107_v55 = vld [vmem:[%s2579_s4 + $0x30] sm:$0xff]   ;;  %v991_v57 = vld [vmem:[#allocation3] sm:$0x8] }
 0x13e   : > { %1889 = vmatprep.subr.bf16.mxu0 %v2093_v42  ;;  %v2109_v56 = vld [vmem:[%s2579_s4 + $0xb0] sm:$0xff]   ;;  %v992_v58 = vld [vmem:[#allocation3 + $0x4] sm:$0xf]  ;;  %v993_v60 = vld [vmem:[#allocation3 + $0x8] sm:$0xf]  ;;  %v1761_v63 = vrot.slane %v991_v57, 11 }
 0x13f   : > { %1964 = vmatpush3.bf16.msra.mxu1 %v2094_v43  ;;  %v2108_v61 = vld [vmem:[%s2579_s4 + $0x78] sm:$0xff]   ;;  %v1003_v2 = vrot.slane %v992_v58, 7  ;;  %v1006_v3 = vrot.slane %v993_v60, 7  ;;  %v1024_v6 = vld [vmem:[#allocation3 + $0x8] sm:$0xf]  ;;  %v2119_v58 = vld [vmem:[%s2581_s6 + $0x10] sm:$0xff]  }
 0x140   : > { %1965 = vmatprep.subr.bf16.mxu1 %v2097_v46  ;;  %v1022_v4 = vld [vmem:[#allocation3] sm:$0x8]  ;;  %v1023_v5 = vld [vmem:[#allocation3 + $0x4] sm:$0xf]  ;;  %v1042_v18 = vshrl.u32 %v1024_v6, 16  ;;  %v1045_v19 = vshll.u32 %v1024_v6, 16 }
 0x141   : > { %1890 = vmatpush3.bf16.msra.mxu0 %v2095_v44  ;;  %v1028_v9 = vshrl.u32 %v1022_v4, 16  ;;  %v2110_v11 = vld [vmem:[%s2579_s4 + $0x38] sm:$0xff]   ;;  %v1004_v13 = vsel %vm2386_vm4, %v1761_v63, %v1003_v2  ;;  %v1005_v14 = vrot.slane %v1003_v2, 4  ;;  %v1033_v15 = vshrl.u32 %v1023_v5, 16  ;;  %v2115_v20 = vld [vmem:[%s2581_s6] sm:$0xff]   ;;  %v2124_v2 = vld [vmem:[%s2581_s6 + $0x28] sm:$0xff]  }
 0x142   : > { %1891 = vmatprep.subr.bf16.mxu0 %v2096_v45  ;;  %v2114_v16 = vld [vmem:[%s2579_s4 + $0xb8] sm:$0xff]   ;;  %1018 = vst [vmem:[#allocation4] sm:$0xf] %v1004_v13  ;;  %v1036_v17 = vshll.u32 %v1023_v5, 16  ;;  %v1044_v25 = vrot.slane %v1042_v18, 7  ;;  %v1008_v28 = vrot.slane %v1006_v3, 4 }
 0x143   : > { %1966 = vmatpush3.bf16.msra.mxu1 %v2097_v46  ;;  %v1007_v21 = vsel %vm2386_vm4, %v1005_v14, %v1006_v3  ;;  %v1762_v23 = vrot.slane %v1028_v9, 11  ;;  %v1035_v24 = vrot.slane %v1033_v15, 7  ;;  %v1075_v26 = vld [vmem:[#allocation3 + $0x4] sm:$0xf]  ;;  %v1076_v27 = vld [vmem:[#allocation3 + $0x8] sm:$0xf] }
 0x144   : > { %1967 = vmatprep.subr.bf16.mxu1 %v2100_v49  ;;  %1019 = vst [vmem:[#allocation4 + $0xc] sm:$0xf] %v1007_v21  ;;  %1079 = vst [vmem:[#allocation4 + $0x8] sm:$0xf] %v1075_v26  ;;  %v1077_v33 = vld [vmem:[#allocation3 + $0xc] sm:$0xf]  ;;  %v1047_v35 = vor.u32 %v1045_v19, %v1044_v25 }
 0x145   : > { %1892 = vmatpush3.bf16.msra.mxu0 %v2098_v47  ;;  %v1038_v29 = vor.u32 %v1036_v17, %v1035_v24  ;;  %v1040_v30 = vrot.slane %v1035_v24, 4  ;;  %1080 = vst [vmem:[#allocation4 + $0x14] sm:$0xf] %v1076_v27  ;;  %v1078_v34 = vld [vmem:[#allocation3 + $0x10] sm:$0xf]  ;;  %v1049_v40 = vrot.slane %v1044_v25, 4 }
 0x146   : > { %1893 = vmatprep.subr.bf16.mxu0 %v2099_v48  ;;  %1081 = vst [vmem:[#allocation4 + $0x20] sm:$0xf] %v1077_v33  ;;  %1082 = vst [vmem:[#allocation4 + $0x2c] sm:$0xf] %v1078_v34  ;;  %v994_v12 = vld [vmem:[#allocation3 + $0xc] sm:$0xf] }
 0x147   : > { %1968 = vmatpush3.bf16.msra.mxu1 %v2100_v49  ;;  %v1039_v36 = vsel %vm2391_vm6, %v1762_v23, %v1038_v29  ;;  %v1048_v31 = vsel %vm2391_vm6, %v1040_v30, %v1047_v35  ;;  %v995_v22 = vld [vmem:[#allocation3 + $0x10] sm:$0x7]  ;;  %v1009_v32 = vrot.slane %v994_v12, 7  ;;  %v1025_v37 = vld [vmem:[#allocation3 + $0xc] sm:$0xf]  ;;  %v2120_v60 = vld [vmem:[%s2581_s6 + $0x18] sm:$0xff]  }
 0x148   : > { %1969 = vmatprep.subr.bf16.mxu1 %v2103_v51  ;;  %1071 = vst [vmem:[#allocation4 + $0x4] sm:$0xf] %v1039_v36  ;;  %1072 = vst [vmem:[#allocation4 + $0x10] sm:$0xf] %v1048_v31  ;;  %v1012_v38 = vrot.slane %v995_v22, 7  ;;  %v1051_v41 = vshrl.u32 %v1025_v37, 16 }
 0x149   : > { %1894 = vmatpush3.bf16.msra.mxu0 %v2101_v50  ;;  %v1026_v39 = vld [vmem:[#allocation3 + $0x10] sm:$0xf]  ;;  %v1054_v42 = vshll.u32 %v1025_v37, 16  ;;  %v1010_v43 = vsel %vm2386_vm4, %v1008_v28, %v1009_v32  ;;  %v1011_v44 = vrot.slane %v1009_v32, 4  ;;  %v2121_v62 = vld [vmem:[%s2581_s6 + $0x20] sm:$0xff]   ;;  %v2126_v3 = vld [vmem:[%s2581_s6 + $0x30] sm:$0xff]  }
 0x14a   : > { %1895 = vmatprep.subr.bf16.mxu0 %v2102_v52  ;;  %v1060_v45 = vshrl.u32 %v1026_v39, 16  ;;  %v1063_v46 = vshll.u32 %v1026_v39, 16  ;;  %1020 = vst [vmem:[#allocation4 + $0x18] sm:$0xf] %v1010_v43  ;;  %v1053_v50 = vrot.slane %v1051_v41, 7  ;;  %v2127_v4 = vld [vmem:[%s2581_s6 + $0x38] sm:$0xff]  }
 0x14b   : > { %1970 = vmatpush3.bf16.msra.mxu1 %v2103_v51  ;;  %v1013_v49 = vsel %vm2386_vm4, %v1011_v44, %v1012_v38  ;;  %v2111_v52 = vld [vmem:[#allocation4] ss:$12 sps:$4 sm:$0xff]   ;;  %v1794_v33 = vld [vmem:[%s2582_s7] ss:$0 sm:$0xff] }
 0x14c   : > { %1971 = vmatprep.subr.bf16.mxu1 %v2106_v53  ;;  %v2116_v47 = vld [vmem:[#allocation4 + $0x8] ss:$12 sps:$4 sm:$0xff]   ;;  %1021 = vst [vmem:[#allocation4 + $0x24] sm:$0xf] %v1013_v49  ;;  %v1062_v51 = vrot.slane %v1060_v45, 7 }
 0x14d   : > { %1896 = vmatpush3.bf16.msra.mxu0 %v2104_v10  ;;  %v2117_v48 = vld [vmem:[#allocation4 + $0x20] ss:$12 sps:$4 sm:$0xff]   ;;  %1977 = vmatprep.mubr.bf16.mxu1 %v2116_v47 }
 0x14e   : > { %1897 = vmatprep.subr.bf16.mxu0 %v2105_v54  ;;  %v1058_v54 = vrot.slane %v1053_v50, 4 }
 0x14f   : > { %1972 = vmatpush3.bf16.msra.mxu1 %v2106_v53  ;;  %v2113_v10 = vld [vmem:[#allocation4 + $0x4] ss:$12 sps:$4 sm:$0xff]   ;;  %v1056_v53 = vor.u32 %v1054_v42, %v1053_v50 }
 0x150   : > { %1973 = vmatprep.subr.bf16.mxu1 %v2109_v56  ;;  %1354 = vmatprep.mubr.bf16.mxu0 %v2113_v10 }
 0x151   : > { %1898 = vmatpush3.bf16.msra.mxu0 %v2107_v55  ;;  %v1065_v55 = vor.u32 %v1063_v46, %v1062_v51  ;;  %v1057_v57 = vsel %vm2391_vm6, %v1049_v40, %v1056_v53 }
 0x152   : > { %1899 = vmatprep.subr.bf16.mxu0 %v2108_v61  ;;  %1073 = vst [vmem:[#allocation4 + $0x1c] sm:$0xf] %v1057_v57 }
 0x153   : > { %1974 = vmatpush3.bf16.msra.mxu1 %v2109_v56  ;;  %v2118_v56 = vld [vmem:[%s2581_s6 + $0x8] sm:$0xff]   ;;  %v1066_v59 = vsel %vm2391_vm6, %v1058_v54, %v1065_v55  ;;  %v2125_v63 = vld [vmem:[#allocation4 + $0x18] ss:$12 sps:$4 sm:$0xff]  }
 0x154   : > { %1975 = vmatprep.subr.bf16.mxu1 %v2114_v16  ;;  %1074 = vst [vmem:[#allocation4 + $0x28] sm:$0xf] %v1066_v59 }
 0x155   : > { %1900 = vmatpush3.bf16.msra.mxu0 %v2110_v11  ;;  %v1763_v11 = vld [vmem:[%s2580_s5] ss:$0 sm:$0xff] }
 0x156   : > { %1981 = vmatprep.subr.bf16.mxu0 %v2115_v20 }
 0x157   : > { %1976 = vmatpush3.bf16.msra.mxu1 %v2114_v16 }
 0x158   : > { %1355 = vmatmul.mubr.bf16.vlgmr.msra.gmra.mrb[12].mxu0 %v2111_v52 }
 0x159   : > { %1982 = vmatpush3.bf16.msra.mxu0 %v2115_v20 }
 0x15a   : > { %1978 = vmatmul.mubr.bf16.vlgmr.msra.gmra.mrb[12].mxu1 %v2117_v48  ;;  %1983 = vmatprep.subr.bf16.mxu0 %v2118_v56 }
 0x15b   : > { %v2122_v61 = vld [vmem:[#allocation4 + $0x1c] ss:$12 sps:$4 sm:$0xff]  }
 0x15c   : > { %1362 = vmatprep.mubr.bf16.mxu0 %v2122_v61 }
 0x15d   : > { %1984 = vmatpush3.bf16.msra.mxu0 %v2118_v56 }
 0x15e   : > { %1985 = vmatprep.subr.bf16.mxu0 %v2119_v58 }
 0x160   : > { %1363 = vmatmul.mubr.bf16.gmra.mrb[16].mxu0 %v2125_v63 }
 0x161   : > { %1986 = vmatpush3.bf16.msra.mxu0 %v2119_v58  ;;  %1997 = vmatprep.mubr.bf16.mxu0 %v1700_v7 }
 0x162   : > { %1987 = vmatprep.subr.bf16.mxu0 %v2120_v60 }
 0x165   : > { %1988 = vmatpush3.bf16.msra.mxu0 %v2120_v60 }
 0x166   : > { %1989 = vmatprep.subr.bf16.mxu0 %v2121_v62 }
 0x169   : > { %1990 = vmatpush3.bf16.msra.mxu0 %v2121_v62 }
 0x16a   : > { %1991 = vmatprep.subr.bf16.mxu0 %v2124_v2 }
 0x16d   : > { %1992 = vmatpush3.bf16.msra.mxu0 %v2124_v2 }
 0x16e   : > { %1993 = vmatprep.subr.bf16.mxu0 %v2126_v3 }
 0x171   : > { %1994 = vmatpush3.bf16.msra.mxu0 %v2126_v3 }
 0x172   : > { %1995 = vmatprep.subr.bf16.mxu0 %v2127_v4 }
 0x175   : > { %1996 = vmatpush3.bf16.msra.mxu0 %v2127_v4 }
 0x178   : > { %1998 = vmatmul.mubr.bf16.vlgmr.msra.gmra.mrb[20].mxu0 %v2279_v8 }
 0x22b   : > { %v1901_v6 = vpop.f32.mrb[12].mxu0 }
 0x22c   : > { %v1902_v9 = vpop.f32.mrb[13].mxu0 }
 0x22d   : > { %v1979_v0 = vpop.f32.mrb[12].mxu1  ;;  %v1903_v13 = vadd.f32 %v1902_v9, %v1901_v6  ;;  %v1904_v14 = vpop.f32.mrb[14].mxu0 }
 0x22e   : > { %v1405_v1 = vpop.f32.mrb[13].mxu1  ;;  %v1905_v15 = vpop.f32.mrb[15].mxu0 }
 0x22f   : > { %v1980_v7 = vpop.f32.mrb[14].mxu1  ;;  %v1906_v16 = vadd.f32 %v1905_v15, %v1904_v14  ;;  %v1357_v17 = vadd.f32 %v1903_v13, %v1763_v11 }
 0x230   : > { %v1408_v5 = vpop.f32.mrb[15].mxu1 }
 0x231   : > { %v1406_v18 = vadd.f32 %v1405_v1, %v1357_v17  ;;  %v1360_v19 = vadd.f32 %v1906_v16, %v1763_v11 }
 0x233   : > { %v1409_v20 = vadd.f32 %v1408_v5, %v1360_v19  ;;  %v1907_v21 = vpop.f32.mrb[16].mxu0  ;;  %v1420_v12 = vmax.f32 %v1406_v18, 0.0 }
 0x234   : > { %v1908_v8 = vpop.f32.mrb[17].mxu0 }
 0x235   : > { %v1909_v23 = vadd.f32 %v1908_v8, %v1907_v21  ;;  %v1910_v24 = vpop.f32.mrb[18].mxu0  ;;  %v1421_v41 = vmax.f32 %v1409_v20, 0.0 }
 0x236   : > { %v1911_v25 = vpop.f32.mrb[19].mxu0 }
 0x237   : > { %v1365_v26 = vadd.f32 %v1909_v23, %v1763_v11  ;;  %v1912_v27 = vadd.f32 %v1911_v25, %v1910_v24 }
 0x239   : > { %v1414_v28 = vadd.f32 %v1979_v0, %v1365_v26  ;;  %v1368_v29 = vadd.f32 %v1912_v27, %v1763_v11 }
 0x23b   : > { %v1417_v30 = vadd.f32 %v1980_v7, %v1368_v29  ;;  %v1422_v35 = vmax.f32 %v1414_v28, 0.0 }
 0x23d   : > { %v1423_v38 = vmax.f32 %v1417_v30, 0.0 }
 0x24b   : > { %v1999_v34 = vpop.f32.mrb[20].mxu0 }
 0x24c   : > { %v1538_v36 = vadd.f32 %v1999_v34, %v1794_v33  ;;  %v1529_v31 = vpop.f32.mrb[21].mxu0 }
 0x24d   : > { %v1530_v22 = vadd.f32 %v1794_v33, %v1529_v31  ;;  %v2000_v32 = vpop.f32.mrb[22].mxu0 }
 0x24e   : > { %v1546_v37 = vadd.f32 %v1538_v36, %v1422_v35  ;;  %v1541_v39 = vadd.f32 %v2000_v32, %v1794_v33  ;;  %v1532_v40 = vpop.f32.mrb[23].mxu0 }
 0x24f   : > { %v1544_v42 = vadd.f32 %v1530_v22, %v1420_v12  ;;  %v1533_v43 = vadd.f32 %v1794_v33, %v1532_v40 }
 0x250   : > { %v1547_v44 = vadd.f32 %v1541_v39, %v1423_v38  ;;  %v1550_v46 = vmax.f32 %v1546_v37, 0.0 }
 0x251   : > { %v1545_v45 = vadd.f32 %v1533_v43, %v1421_v41  ;;  %v1548_v48 = vmax.f32 %v1544_v42, 0.0 }
 0x252   : > { %v1551_v47 = vmax.f32 %v1547_v44, 0.0 }
 0x253   : > { %v1549_v49 = vmax.f32 %v1545_v45, 0.0 }
 0x254   : > { %v1836_v50 = vpack.c.bf16 %v1551_v47, %v1550_v46 }
 0x255   : > { %v1831_v51 = vpack.c.bf16 %v1549_v49, %v1548_v48 }
 0x256   : > { %1839 = vst [vmem:[%s2261_s22 + $0x8] sm:$0xff] %v1836_v50  }
 0x257   : > { %1832 = vst [vmem:[%s2261_s22] sm:$0xff] %v1831_v51  }
 0x258 PF: > { %s18_s9 = sadd.s32 1, %s2170_s9   ;;  %s2588_s27 = smov %s2162_s29 }
 0x259   : > { %p15_p11 = scmp.ge.s32.totalorder %s18_s9, 6   ;;  %s2589_s28 = smov %s2166_s30 }
 0x25a   : > { %s2590_s29 = smov %s2593_s10  ;;  %s2591_s30 = smov %s2597_s11 }
 0x25b   :  { %17 = sbr.rel (!%p15_p11) target bundleno = 3 (0x3), region = 97 }

// kernel: _lambda_.4
= control target key start
LH: loop header
LB: loop body
LE: loop exit
PB: predicated region body
PF: predicated region fallthrough
CT: control target
= control target key end

     0   :  { %s2178_s27 = smov 0   ;;  %s2180_s28 = smov 0   ;;  %s2517_s0 = inlined_call_operand.vmem [shape: bf16[2,64,128], index: 0, kind: input, shape index: {}, may-alias: {0,1}]   ;;  %s2518_s1 = inlined_call_operand.vmem [shape: bf16[2,64,128], index: 1, kind: input, shape index: {}, may-alias: {0,1}]   ;;  %s2519_s2 = inlined_call_operand.vmem [shape: bf16[384,128], index: 2, kind: input, shape index: {}]   ;;  %s2520_s3 = inlined_call_operand.vmem [shape: f32[1,128], index: 3, kind: input, shape index: {}, may-alias: {3,5,7}]   ;;  %s2521_s4 = inlined_call_operand.vmem [shape: bf16[384,128], index: 4, kind: input, shape index: {}]   ;;  %s2522_s5 = inlined_call_operand.vmem [shape: f32[1,128], index: 5, kind: input, shape index: {}, may-alias: {3,5,7}]   ;;  %s2523_s6 = inlined_call_operand.vmem [shape: bf16[128,128], index: 6, kind: input, shape index: {}]   ;;  %s2524_s7 = inlined_call_operand.vmem [shape: f32[1,128], index: 7, kind: input, shape index: {}, may-alias: {3,5,7}]   ;;  %s2525_s8 = inlined_call_operand.vmem [shape: bf16[2,64,128], index: 8, kind: output, shape index: {}]  }
   0x1   :  { %s2182_s29 = smov 0   ;;  %s2184_s30 = smov 0  }
   0x2   :  { %s2186_s9 = smov 0  }
   0x3 LB: > { %s27_s10 = sadd.s32 1, %s2119_s29  ;;  %s30_s11 = sadd.s32 1, %s2123_s30  ;;  %s2127_s9 = sphi %s2186_s9, %s18_s9   ;;  %s2123_s30 = sphi %s2184_s30, %s2533_s30   ;;  %s2119_s29 = sphi %s2182_s29, %s2532_s29   ;;  %s2115_s28 = sphi %s2180_s28, %s2531_s28   ;;  %s2111_s27 = sphi %s2178_s27, %s2530_s27  }
   0x4   : > { %p28_p0 = scmp.ge.s32.totalorder %s27_s10, 2  ;;  %p1641_p1 = scmp.ge.s32.totalorder %s2127_s9, 1 }
   0x5   : > { %p312_p2 = scmp.lt.s32.totalorder %s2127_s9, 5 }
   0x6   : > { %s2535_s10 = smov (%p28_p0, %s27_s10), 0  ;;  %s2537_s11 = smov (!%p28_p0, %s30_s11), %s2123_s30 }
   0x7   : > { %p313_p3 = pnand %p1641_p1, %p312_p2  ;;  %p32_p4 = scmp.ge.s32.totalorder %s2537_s11, 2 }
   0x8   : > { %s1642_s12 = sshll.u32 (!%p313_p3), %s2111_s27, 2  ;;  %p367_p5 = scmp.lt.s32.totalorder (!%p313_p3), %s2115_s28, 1 }
   0x9   : > { %s2539_s11 = smov (%p32_p4, %s2537_s11), 0  ;;  %316 = sbr.rel (%p313_p3) target bundleno = 803 (0x323), region = 52 }
   0xa   : > { %p369_p6 = scmp.lt.s32.totalorder (!%p313_p3), %s1642_s12, 7  ;;  %s1645_s13 = sadd.s32 (!%p313_p3), 4294967295, %s2111_s27 }
   0xb   : > { %p377_p7 = scmp.gt.s32.totalorder (!%p313_p3), %s1645_s13, 0  ;;  %p1652_p9 = scmp.ne.s32.totalorder (!%p313_p3), %s2111_s27, 0 }
  0x10   : > { %s2541_s28 = smov (!%p367_p5, %s2115_s28), 1  ;;  %s2543_s12 = smov (!%p369_p6, %s1642_s12), 7 }
  0x11   : > { %s1643_s14 = sshll.u32 %s2541_s28, 3  ;;  %s2545_s13 = smov (!%p377_p7, %s1645_s13), 0  ;;  %v2129_v4 = vmov (!%p1652_p9), 0  }
  0x12   : > { %s372_s15 = sadd.s32 %s1643_s14, %s2543_s12  ;;  %s1646_s23 = sshll.u32 %s2545_s13, 2  ;;  %411 = vst [vmem:[#allocation2] sm:$0xff] (!%p1652_p9), %v2129_v4 }
  0x13   : > { %s1644_s16 = sshll.u32 %s372_s15, 2  ;;  %p382_p8 = scmp.lt.s32.totalorder %s1646_s23, 7 }
  0x14   : > { %s374_s19 = scalar_lea.vmem %s2517_s0, %s1644_s16  ;;  %s2218_s22 = scalar_lea.vmem %s2525_s8, %s1644_s16 }
  0x15   : > { %v2220_v0 = vld [vmem:[%s374_s19] sm:$0xf]  ;;  %v2222_v1 = vld [vmem:[%s374_s19 + $0x4] sm:$0xf]  ;;  %v2224_v2 = vld [vmem:[%s374_s19 + $0x8] sm:$0xf] }
  0x16   : > { %v2226_v3 = vld [vmem:[%s374_s19 + $0xc] sm:$0xf]  ;;  %s2547_s23 = smov (!%p382_p8, %s1646_s23), 7  ;;  %410 = sbr.rel (%p1652_p9) target bundleno = 29 (0x1d), region = 56 }
  0x17   : > { %s385_s24 = sadd.s32 %s1643_s14, %s2547_s23 }
  0x18   : > { %s1648_s25 = sshll.u32 %s385_s24, 2 }
  0x19   : > { %s387_s12 = scalar_lea.vmem %s2518_s1, %s1648_s25 }
  0x1d PF: > { %p1653_p10 = scmp.le.s32.totalorder %s2111_s27, 0 }
  0x1e   : > { %v2000_v5 = vld [vmem:[%s387_s12 + $0x8] sm:$0xff] (!%p1653_p10)  }
  0x1f   : > { %415 = sbr.rel (%p1653_p10) target bundleno = 38 (0x26), region = 60  ;;  %424 = vst [vmem:[#allocation2] sm:$0xff] (!%p1653_p10), %v2000_v5 }
  0x26 PF: > { %v2001_v6 = vld [vmem:[%s2519_s2 + $0x40] sm:$0xff]   ;;  %v1656_v7 = vcombine.low %v2224_v2, %v2226_v3  ;;  %v2130_v9 = vmov 0.0   ;;  %v2249_v11 = vcombine.low %v2220_v0, %v2220_v0  ;;  %v2253_v12 = vcombine.low %v2222_v1, %v2222_v1  ;;  %v2004_v14 = vld [vmem:[%s2519_s2 + $0x48] sm:$0xff]   ;;  %v2007_v18 = vld [vmem:[%s2519_s2 + $0x50] sm:$0xff]  }
  0x27   : > { %v2002_v8 = vld [vmem:[%s2519_s2] sm:$0xff]   ;;  %1888 = vmatprep.subr.bf16.mxu1 %v2130_v9  ;;  %1795 = vmatprep.subr.bf16.mxu0 %v2001_v6  ;;  %v2087_v13 = vcombine.low %v2224_v2, %v2224_v2  ;;  %v2088_v15 = vcombine.low %v2226_v3, %v2226_v3  ;;  %v2005_v16 = vld [vmem:[%s2519_s2 + $0x8] sm:$0xff]   ;;  %v2008_v19 = vld [vmem:[%s2519_s2 + $0x10] sm:$0xff]   ;;  %vm2131_vm0 = vmmov 0   ;;  %vm457_vm1 = vcmask 1041408  }
  0x28   : > { %v2003_v10 = vld [vmem:[%s2519_s2 + $0x80] sm:$0xff]   ;;  %438 = vst [vmem:[#allocation2 + $0x10] sm:$0xff] %v1656_v7  ;;  %1796 = vmatpush3.bf16.msra.mxu0 %v2002_v8  ;;  %555 = vst [vmem:[#allocation4 + $0x14] sm:$0xf] %v2249_v11  ;;  %v2006_v17 = vld [vmem:[%s2519_s2 + $0x88] sm:$0xff]   ;;  %1904 = vmatprep.mubr.msk.bf16.mxu1 %vm2131_vm0, %v2130_v9  ;;  %vm458_vm2 = vcmask 1045508  }
  0x29   : > { %1889 = vmatpush3.bf16.msra.mxu1 %v2003_v10  ;;  %556 = vst [vmem:[#allocation4 + $0x20] sm:$0xf] %v2253_v12  ;;  %557 = vst [vmem:[#allocation4 + $0x2c] sm:$0xf] %v2087_v13  ;;  %1797 = vmatprep.subr.bf16.mxu0 %v2004_v14  ;;  %v2009_v20 = vld [vmem:[%s2519_s2 + $0x90] sm:$0xff]   ;;  %v2010_v21 = vld [vmem:[%s2519_s2 + $0x58] sm:$0xff]  }
  0x2a   : > { %1890 = vmatprep.subr.bf16.mxu1 %v2130_v9  ;;  %558 = vst [vmem:[#allocation4 + $0x38] sm:$0xf] %v2088_v15  ;;  %v2011_v22 = vld [vmem:[%s2519_s2 + $0x18] sm:$0xff]   ;;  %v2013_v24 = vld [vmem:[%s2519_s2 + $0x60] sm:$0xff]   ;;  %v2016_v27 = vld [vmem:[%s2519_s2 + $0x68] sm:$0xff]   ;;  %v465_v28 = vrot.slane %v2249_v11, 6 }
  0x2b   : > { %v2012_v23 = vld [vmem:[%s2519_s2 + $0x98] sm:$0xff]   ;;  %v2014_v25 = vld [vmem:[%s2519_s2 + $0x20] sm:$0xff]   ;;  %v468_v29 = vrot.slane %v2253_v12, 6  ;;  %vm504_vm3 = vcmask 1040384   ;;  %v2017_v30 = vld [vmem:[%s2519_s2 + $0x28] sm:$0xff]   ;;  %v512_v33 = vrot.slane %v2249_v11, 7 }
  0x2c   : > { %1798 = vmatpush3.bf16.msra.mxu0 %v2005_v16  ;;  %v2015_v26 = vld [vmem:[%s2519_s2 + $0xa0] sm:$0xff]   ;;  %v467_v31 = vrot.slane %v465_v28, 4  ;;  %v2018_v32 = vld [vmem:[%s2519_s2 + $0xa8] sm:$0xff]   ;;  %v2019_v34 = vld [vmem:[%s2519_s2 + $0x70] sm:$0xff]   ;;  %vm505_vm4 = vcmask 1044484   ;;  %v515_v39 = vrot.slane %v2253_v12, 7 }
  0x2d   : > { %1891 = vmatpush3.bf16.msra.mxu1 %v2006_v17  ;;  %1799 = vmatprep.subr.bf16.mxu0 %v2007_v18  ;;  %v2020_v35 = vld [vmem:[%s2519_s2 + $0x30] sm:$0xff]   ;;  %v514_v36 = vrot.slane %v512_v33, 4  ;;  %v2022_v38 = vld [vmem:[%s2519_s2 + $0x78] sm:$0xff]   ;;  %v439_v40 = vld [vmem:[#allocation2] sm:$0xfc]  ;;  %v470_v50 = vrot.slane %v468_v29, 4 }
  0x2e   : > { %1892 = vmatprep.subr.bf16.mxu1 %v2130_v9  ;;  %v2021_v37 = vld [vmem:[%s2519_s2 + $0xb0] sm:$0xff]   ;;  %vm2331_vm5 = vmor %vm457_vm1, %vm458_vm2  ;;  %v486_v42 = vld [vmem:[#allocation2] sm:$0xf8]  ;;  %v1657_v43 = vcombine.low %v439_v40, %v439_v40  ;;  %v1658_v44 = vcombine.high %v439_v40, %v439_v40  ;;  %v517_v55 = vrot.slane %v515_v39, 4 }
  0x2f   : > { %v1664_v45 = vcombine.low %v486_v42, %v486_v42  ;;  %vm2337_vm6 = vmor %vm504_vm3, %vm505_vm4  ;;  %v1665_v47 = vcombine.high %v486_v42, %v486_v42  ;;  %v2032_v48 = vld [vmem:[#allocation2 + $0x4] ss:$0 sps:$4 sm:$0xff]   ;;  %v469_v49 = vsel %vm2331_vm5, %v467_v31, %v468_v29  ;;  %v2023_v56 = vld [vmem:[%s2519_s2 + $0x38] sm:$0xff]  }
  0x30   : > { %1800 = vmatpush3.bf16.msra.mxu0 %v2008_v19  ;;  %v516_v51 = vsel %vm2337_vm6, %v514_v36, %v515_v39  ;;  %v1663_v52 = vrot.slane %v1657_v43, 10  ;;  %v462_v53 = vrot.slane %v1658_v44, 6  ;;  %483 = vst [vmem:[#allocation4 + $0x18] sm:$0xf] %v469_v49  ;;  %554 = vst [vmem:[#allocation4 + $0x8] sm:$0xf] %v2032_v48 }
  0x31   : > { %1893 = vmatpush3.bf16.msra.mxu1 %v2009_v20  ;;  %1801 = vmatprep.subr.bf16.mxu0 %v2010_v21  ;;  %v1670_v54 = vrot.slane %v1664_v45, 11  ;;  %530 = vst [vmem:[#allocation4 + $0x1c] sm:$0xf] %v516_v51  ;;  %v509_v57 = vrot.slane %v1665_v47, 7  ;;  %v441_v58 = vld [vmem:[#allocation2 + $0x10] sm:$0x3f] }
  0x32   : > { %1894 = vmatprep.subr.bf16.mxu1 %v2130_v9  ;;  %v488_v59 = vld [vmem:[#allocation2 + $0x10] sm:$0x7f]  ;;  %v463_v60 = vsel %vm2331_vm5, %v1663_v52, %v462_v53  ;;  %v464_v61 = vrot.slane %v462_v53, 4  ;;  %v2031_v62 = vld [vmem:[%s2519_s2 + $0xb8] sm:$0xff]   ;;  %v1661_v63 = vcombine.low %v441_v58, %v441_v58  ;;  %v1662_v7 = vcombine.high %v441_v58, %v441_v58 }
  0x33   : > { %v1668_v4 = vcombine.low %v488_v59, %v488_v59  ;;  %481 = vst [vmem:[#allocation4] sm:$0xf] %v463_v60  ;;  %v510_v5 = vsel %vm2337_vm6, %v1670_v54, %v509_v57  ;;  %v511_v6 = vrot.slane %v509_v57, 4  ;;  %v1669_v8 = vcombine.high %v488_v59, %v488_v59 }
  0x34   : > { %1802 = vmatpush3.bf16.msra.mxu0 %v2011_v22  ;;  %v466_v10 = vsel %vm2331_vm5, %v464_v61, %v465_v28  ;;  %528 = vst [vmem:[#allocation4 + $0x4] sm:$0xf] %v510_v5  ;;  %v471_v11 = vrot.slane %v1661_v63, 6  ;;  %v474_v14 = vrot.slane %v1662_v7, 6 }
  0x35   : > { %1895 = vmatpush3.bf16.msra.mxu1 %v2012_v23  ;;  %1803 = vmatprep.subr.bf16.mxu0 %v2013_v24  ;;  %v518_v12 = vrot.slane %v1668_v4, 7  ;;  %482 = vst [vmem:[#allocation4 + $0xc] sm:$0xf] %v466_v10  ;;  %v513_v13 = vsel %vm2337_vm6, %v511_v6, %v512_v33  ;;  %v521_v15 = vrot.slane %v1669_v8, 7 }
  0x36   : > { %1896 = vmatprep.subr.bf16.mxu1 %v2130_v9  ;;  %529 = vst [vmem:[#allocation4 + $0x10] sm:$0xf] %v513_v13  ;;  %v472_v16 = vsel %vm2331_vm5, %v470_v50, %v471_v11  ;;  %v473_v18 = vrot.slane %v471_v11, 4 }
  0x37   : > { %v519_v17 = vsel %vm2337_vm6, %v517_v55, %v518_v12  ;;  %v520_v19 = vrot.slane %v518_v12, 4  ;;  %484 = vst [vmem:[#allocation4 + $0x24] sm:$0xf] %v472_v16  ;;  %v2033_v20 = vld [vmem:[#allocation4 + $0x8] ss:$12 sps:$4 sm:$0xff]  }
  0x38   : > { %1804 = vmatpush3.bf16.msra.mxu0 %v2014_v25  ;;  %531 = vst [vmem:[#allocation4 + $0x28] sm:$0xf] %v519_v17  ;;  %v475_v21 = vsel %vm2331_vm5, %v473_v18, %v474_v14 }
  0x39   : > { %1897 = vmatpush3.bf16.msra.mxu1 %v2015_v26  ;;  %1805 = vmatprep.subr.bf16.mxu0 %v2016_v27  ;;  %v522_v22 = vsel %vm2337_vm6, %v520_v19, %v521_v15  ;;  %485 = vst [vmem:[#allocation4 + $0x30] sm:$0xf] %v475_v21  ;;  %v2039_v26 = vld [vmem:[#allocation4 + $0x20] ss:$12 sps:$4 sm:$0xff]  }
  0x3a   : > { %1898 = vmatprep.subr.bf16.mxu1 %v2130_v9  ;;  %532 = vst [vmem:[#allocation4 + $0x34] sm:$0xf] %v522_v22  ;;  %v2132_v22 = vmov (!%p1652_p9), 0  }
  0x3c   : > { %1806 = vmatpush3.bf16.msra.mxu0 %v2017_v30  ;;  %v2028_v23 = vld [vmem:[#allocation4] ss:$12 sps:$4 sm:$0xff]   ;;  %v2044_v30 = vld [vmem:[#allocation4 + $0x38] ss:$0 sps:$4 sm:$0xff]  }
  0x3d   : > { %1899 = vmatpush3.bf16.msra.mxu1 %v2018_v32  ;;  %1807 = vmatprep.subr.bf16.mxu0 %v2019_v34  ;;  %v2030_v24 = vld [vmem:[#allocation4 + $0x4] ss:$12 sps:$4 sm:$0xff]  }
  0x3e   : > { %1900 = vmatprep.subr.bf16.mxu1 %v2130_v9  ;;  %843 = vmatprep.mubr.bf16.mxu0 %v2030_v24  ;;  %v2038_v28 = vld [vmem:[#allocation4 + $0x18] ss:$12 sps:$4 sm:$0xff]  }
  0x3f   : > { %v2036_v25 = vld [vmem:[#allocation4 + $0x1c] ss:$12 sps:$4 sm:$0xff]  }
  0x40   : > { %1808 = vmatpush3.bf16.msra.mxu0 %v2020_v35 }
  0x41   : > { %1901 = vmatpush3.bf16.msra.mxu1 %v2021_v37  ;;  %1809 = vmatprep.subr.bf16.mxu0 %v2022_v38  ;;  %v567_v27 = vld [vmem:[#allocation4 + $0x30] sm:$0xff] }
  0x42   : > { %1902 = vmatprep.subr.bf16.mxu1 %v2130_v9  ;;  %v1684_v29 = vcombine.high %v567_v27, %v567_v27  ;;  %v1683_v31 = vcombine.low %v567_v27, %v567_v27  ;;  %v1676_v38 = vld [vmem:[%s2520_s3] ss:$0 sm:$0xff] }
  0x44   : > { %1810 = vmatpush3.bf16.msra.mxu0 %v2023_v56 }
  0x45   : > { %1903 = vmatpush3.bf16.msra.mxu1 %v2031_v62 }
  0x47   : > { %844 = vmatmul.mubr.bf16.vlgmr.msra.gmra.mrb[0].mxu0 %v2028_v23 }
  0x48   : > { %1905 = vmatmul.mubr.bf16.vlgmr.msra.gmra.mrb[0].mxu1 %v2033_v20  ;;  %851 = vmatprep.mubr.bf16.mxu0 %v2036_v25 }
  0x49   : > { %1908 = vmatprep.mubr.msk.bf16.mxu1 %vm2131_vm0, %v2130_v9 }
  0x4f   : > { %852 = vmatmul.mubr.bf16.gmra.mrb[4].mxu0 %v2038_v28 }
  0x50   : > { %1909 = vmatmul.mubr.bf16.gmra.mrb[4].mxu1 %v2039_v26  ;;  %859 = vmatprep.mubr.bf16.mxu0 %v1684_v29 }
  0x51   : > { %1912 = vmatprep.mubr.msk.bf16.mxu1 %vm2131_vm0, %v2130_v9 }
  0x57   : > { %860 = vmatmul.mubr.bf16.gmra.mrb[8].mxu0 %v1683_v31 }
  0x58   : > { %1913 = vmatmul.mubr.bf16.gmra.mrb[8].mxu1 %v2044_v30 }
 0x11a   : > { %v1811_v36 = vpop.f32.mrb[0].mxu0 }
 0x11b   : > { %v901_v32 = vpop.f32.mrb[0].mxu1  ;;  %v1812_v37 = vpop.f32.mrb[1].mxu0 }
 0x11c   : > { %v1906_v33 = vpop.f32.mrb[1].mxu1  ;;  %v1813_v39 = vadd.f32 %v1812_v37, %v1811_v36  ;;  %v1814_v9 = vpop.f32.mrb[2].mxu0 }
 0x11d   : > { %v904_v34 = vpop.f32.mrb[2].mxu1  ;;  %v1815_v42 = vpop.f32.mrb[3].mxu0 }
 0x11e   : > { %v1907_v35 = vpop.f32.mrb[3].mxu1  ;;  %v846_v44 = vadd.f32 %v1813_v39, %v1676_v38  ;;  %v1816_v45 = vadd.f32 %v1815_v42, %v1814_v9 }
 0x120   : > { %v902_v49 = vadd.f32 %v901_v32, %v846_v44  ;;  %v849_v50 = vadd.f32 %v1816_v45, %v1676_v38 }
 0x122   : > { %v905_v51 = vadd.f32 %v904_v34, %v849_v50  ;;  %v1817_v52 = vpop.f32.mrb[4].mxu0  ;;  %v923_v54 = vmax.f32 %v902_v49, 0.0 }
 0x123   : > { %v909_v40 = vpop.f32.mrb[4].mxu1  ;;  %v1818_v53 = vpop.f32.mrb[5].mxu0 }
 0x124   : > { %v1910_v43 = vpop.f32.mrb[5].mxu1  ;;  %v924_v55 = vmax.f32 %v905_v51, 0.0  ;;  %v1819_v56 = vadd.f32 %v1818_v53, %v1817_v52  ;;  %v1820_v57 = vpop.f32.mrb[6].mxu0 }
 0x125   : > { %v912_v47 = vpop.f32.mrb[6].mxu1  ;;  %v1821_v59 = vpop.f32.mrb[7].mxu0 }
 0x126   : > { %v1911_v48 = vpop.f32.mrb[7].mxu1  ;;  %v1776_v61 = vpack.c.bf16 %v924_v55, %v923_v54  ;;  %v854_v62 = vadd.f32 %v1819_v56, %v1676_v38  ;;  %v1822_v63 = vadd.f32 %v1821_v59, %v1820_v57 }
 0x128   : > { %1777 = vst [vmem:[#allocation3] sm:$0xff] %v1776_v61   ;;  %v910_v6 = vadd.f32 %v909_v40, %v854_v62  ;;  %v857_v7 = vadd.f32 %v1822_v63, %v1676_v38 }
 0x129   : > { %957 = vst [vmem:[#allocation3] sm:$0xf] (!%p1652_p9), %v2132_v22 }
 0x12a   : > { %v913_v8 = vadd.f32 %v912_v47, %v857_v7  ;;  %v1823_v10 = vpop.f32.mrb[8].mxu0  ;;  %v925_v12 = vmax.f32 %v910_v6, 0.0 }
 0x12b   : > { %v917_v58 = vpop.f32.mrb[8].mxu1  ;;  %v1824_v11 = vpop.f32.mrb[9].mxu0 }
 0x12c   : > { %v1914_v60 = vpop.f32.mrb[9].mxu1  ;;  %v926_v13 = vmax.f32 %v913_v8, 0.0  ;;  %v1825_v14 = vadd.f32 %v1824_v11, %v1823_v10  ;;  %v1826_v15 = vpop.f32.mrb[10].mxu0 }
 0x12d   : > { %v920_v4 = vpop.f32.mrb[10].mxu1  ;;  %v1827_v16 = vpop.f32.mrb[11].mxu0 }
 0x12e   : > { %v1915_v5 = vpop.f32.mrb[11].mxu1  ;;  %v1781_v17 = vpack.c.bf16 %v926_v13, %v925_v12  ;;  %v862_v18 = vadd.f32 %v1825_v14, %v1676_v38 }
 0x130   : > { %1793 = vst [vmem:[#allocation3 + $0x8] sm:$0xff] %v1781_v17   ;;  %v918_v19 = vadd.f32 %v917_v58, %v862_v18  ;;  %956 = sbr.rel (%p1652_p9) target bundleno = 311 (0x137), region = 64 }
 0x132   : > { %v927_v20 = vmax.f32 %v918_v19, 0.0 }
 0x134   : > { %v1768_v21 = vpack.c.bf16 %v927_v20, %v927_v20 }
 0x136   : > { %953 = vst [vmem:[#allocation3 + $0x10] sm:$0xf] %v1768_v21 }
 0x137 PF: > { %v2045_v23 = vld [vmem:[%s2521_s4 + $0x40] sm:$0xff]   ;;  %v2047_v25 = vld [vmem:[%s2521_s4 + $0x48] sm:$0xff]   ;;  %v2050_v28 = vld [vmem:[%s2521_s4 + $0x50] sm:$0xff]  }
 0x138   : > { %v2046_v24 = vld [vmem:[%s2521_s4] sm:$0xff]   ;;  %1840 = vmatprep.subr.bf16.mxu0 %v2045_v23  ;;  %v2049_v27 = vld [vmem:[%s2521_s4 + $0x8] sm:$0xff]   ;;  %v2052_v30 = vld [vmem:[%s2521_s4 + $0x10] sm:$0xff]  }
 0x139   : > { %1841 = vmatpush3.bf16.msra.mxu0 %v2046_v24  ;;  %v2048_v26 = vld [vmem:[%s2521_s4 + $0x80] sm:$0xff]   ;;  %v2051_v29 = vld [vmem:[%s2521_s4 + $0x88] sm:$0xff]   ;;  %v2053_v31 = vld [vmem:[%s2521_s4 + $0x58] sm:$0xff]  }
 0x13a   : > { %1842 = vmatprep.subr.bf16.mxu0 %v2047_v25  ;;  %1916 = vmatprep.subr.bf16.mxu1 %v2048_v26  ;;  %v2054_v32 = vld [vmem:[%s2521_s4 + $0x90] sm:$0xff]   ;;  %v2055_v33 = vld [vmem:[%s2521_s4 + $0x18] sm:$0xff]   ;;  %v2056_v34 = vld [vmem:[%s2521_s4 + $0x60] sm:$0xff]  }
 0x13b   : > { %1917 = vmatpush3.bf16.msra.mxu1 %v2048_v26  ;;  %v2057_v35 = vld [vmem:[%s2521_s4 + $0x98] sm:$0xff]   ;;  %v2058_v36 = vld [vmem:[%s2521_s4 + $0x20] sm:$0xff]   ;;  %v2059_v38 = vld [vmem:[%s2521_s4 + $0x68] sm:$0xff]  }
 0x13c   : > { %1918 = vmatprep.subr.bf16.mxu1 %v2051_v29  ;;  %v2060_v37 = vld [vmem:[%s2521_s4 + $0xa0] sm:$0xff]   ;;  %v2061_v39 = vld [vmem:[%s2521_s4 + $0x28] sm:$0xff]   ;;  %v2062_v40 = vld [vmem:[%s2521_s4 + $0x70] sm:$0xff]  }
 0x13d   : > { %1843 = vmatpush3.bf16.msra.mxu0 %v2049_v27  ;;  %v2063_v9 = vld [vmem:[%s2521_s4 + $0xa8] sm:$0xff]   ;;  %v2064_v42 = vld [vmem:[%s2521_s4 + $0x30] sm:$0xff]   ;;  %v958_v44 = vld [vmem:[#allocation3] sm:$0xc] }
 0x13e   : > { %1844 = vmatprep.subr.bf16.mxu0 %v2050_v28  ;;  %v2066_v43 = vld [vmem:[%s2521_s4 + $0xb0] sm:$0xff]   ;;  %v959_v45 = vld [vmem:[#allocation3 + $0x4] sm:$0xf]  ;;  %v960_v47 = vld [vmem:[#allocation3 + $0x8] sm:$0xf]  ;;  %v1716_v49 = vrot.slane %v958_v44, 10 }
 0x13f   : > { %1919 = vmatpush3.bf16.msra.mxu1 %v2051_v29  ;;  %v2065_v48 = vld [vmem:[%s2521_s4 + $0x78] sm:$0xff]   ;;  %v970_v50 = vrot.slane %v959_v45, 6  ;;  %v973_v51 = vrot.slane %v960_v47, 6  ;;  %v991_v54 = vld [vmem:[#allocation3 + $0x8] sm:$0xf]  ;;  %v2079_v46 = vld [vmem:[%s2523_s6 + $0x10] sm:$0xff]  }
 0x140   : > { %1920 = vmatprep.subr.bf16.mxu1 %v2054_v32  ;;  %v989_v52 = vld [vmem:[#allocation3] sm:$0x8]  ;;  %v990_v53 = vld [vmem:[#allocation3 + $0x4] sm:$0xf]  ;;  %v1004_v61 = vrot.slane %v991_v54, 7  ;;  %v2077_v63 = vld [vmem:[%s2523_s6] sm:$0xff]  }
 0x141   : > { %1845 = vmatpush3.bf16.msra.mxu0 %v2052_v30  ;;  %v1717_v55 = vrot.slane %v989_v52, 11  ;;  %v2067_v56 = vld [vmem:[%s2521_s4 + $0x38] sm:$0xff]   ;;  %v971_v57 = vsel %vm2331_vm5, %v1716_v49, %v970_v50  ;;  %v972_v58 = vrot.slane %v970_v50, 4  ;;  %v1001_v59 = vrot.slane %v990_v53, 7  ;;  %v1021_v8 = vld [vmem:[#allocation3 + $0x8] sm:$0xf] }
 0x142   : > { %1846 = vmatprep.subr.bf16.mxu0 %v2053_v31  ;;  %v2071_v60 = vld [vmem:[%s2521_s4 + $0xb8] sm:$0xff]   ;;  %985 = vst [vmem:[#allocation4] sm:$0xf] %v971_v57  ;;  %v975_v5 = vrot.slane %v973_v51, 4  ;;  %v1022_v10 = vld [vmem:[#allocation3 + $0xc] sm:$0xf]  ;;  %v1369_v53 = vunpack.c.l.bf16 %v2220_v0  ;;  %v1370_v57 = vunpack.c.l.bf16 %v2222_v1  ;;  %v1372_v1 = vunpack.c.l.bf16 %v2226_v3 }
 0x143   : > { %1921 = vmatpush3.bf16.msra.mxu1 %v2054_v32  ;;  %v1020_v62 = vld [vmem:[#allocation3 + $0x4] sm:$0xf]  ;;  %v974_v4 = vsel %vm2331_vm5, %v972_v58, %v973_v51  ;;  %v1002_v6 = vsel %vm2337_vm6, %v1717_v55, %v1001_v59  ;;  %v1003_v7 = vrot.slane %v1001_v59, 4  ;;  %v1006_v11 = vrot.slane %v1004_v61, 4  ;;  %1025 = vst [vmem:[#allocation4 + $0x14] sm:$0xf] %v1021_v8 }
 0x144   : > { %1922 = vmatprep.subr.bf16.mxu1 %v2057_v35  ;;  %1024 = vst [vmem:[#allocation4 + $0x8] sm:$0xf] %v1020_v62  ;;  %986 = vst [vmem:[#allocation4 + $0xc] sm:$0xf] %v974_v4  ;;  %v1023_v12 = vld [vmem:[#allocation3 + $0x10] sm:$0xf]  ;;  %v1371_v8 = vunpack.c.l.bf16 %v2224_v2 }
 0x145   : > { %1847 = vmatpush3.bf16.msra.mxu0 %v2055_v33  ;;  %1016 = vst [vmem:[#allocation4 + $0x4] sm:$0xf] %v1002_v6  ;;  %1026 = vst [vmem:[#allocation4 + $0x20] sm:$0xf] %v1022_v10  ;;  %v961_v13 = vld [vmem:[#allocation3 + $0xc] sm:$0xf]  ;;  %v1005_v14 = vsel %vm2337_vm6, %v1003_v7, %v1004_v61 }
 0x146   : > { %1848 = vmatprep.subr.bf16.mxu0 %v2056_v34  ;;  %1027 = vst [vmem:[#allocation4 + $0x2c] sm:$0xf] %v1023_v12  ;;  %v962_v15 = vld [vmem:[#allocation3 + $0x10] sm:$0x3]  ;;  %v976_v16 = vrot.slane %v961_v13, 6  ;;  %v2080_v34 = vld [vmem:[%s2523_s6 + $0x18] sm:$0xff]  }
 0x147   : > { %1923 = vmatpush3.bf16.msra.mxu1 %v2057_v35  ;;  %v992_v17 = vld [vmem:[#allocation3 + $0xc] sm:$0xf]  ;;  %1017 = vst [vmem:[#allocation4 + $0x10] sm:$0xf] %v1005_v14  ;;  %v979_v18 = vrot.slane %v962_v15, 6  ;;  %v2078_v30 = vld [vmem:[%s2523_s6 + $0x8] sm:$0xff]  }
 0x148   : > { %1924 = vmatprep.subr.bf16.mxu1 %v2060_v37  ;;  %v993_v19 = vld [vmem:[#allocation3 + $0x10] sm:$0x7]  ;;  %v1007_v20 = vrot.slane %v992_v17, 7  ;;  %v977_v21 = vsel %vm2331_vm5, %v975_v5, %v976_v16  ;;  %v978_v22 = vrot.slane %v976_v16, 4  ;;  %v2081_v35 = vld [vmem:[%s2523_s6 + $0x20] sm:$0xff]  }
 0x149   : > { %1849 = vmatpush3.bf16.msra.mxu0 %v2058_v36  ;;  %v1010_v23 = vrot.slane %v993_v19, 7  ;;  %987 = vst [vmem:[#allocation4 + $0x18] sm:$0xf] %v977_v21  ;;  %v2082_v36 = vld [vmem:[%s2523_s6 + $0x28] sm:$0xff]   ;;  %v1718_v44 = vld [vmem:[%s2522_s5] ss:$0 sm:$0xff] }
 0x14a   : > { %1850 = vmatprep.subr.bf16.mxu0 %v2059_v38  ;;  %v1008_v24 = vsel %vm2337_vm6, %v1006_v11, %v1007_v20  ;;  %v1009_v25 = vrot.slane %v1007_v20, 4  ;;  %v980_v26 = vsel %vm2331_vm5, %v978_v22, %v979_v18  ;;  %v2084_v38 = vld [vmem:[%s2523_s6 + $0x38] sm:$0xff]   ;;  %v1749_v2 = vld [vmem:[%s2524_s7] ss:$0 sm:$0xff] }
 0x14b   : > { %1925 = vmatpush3.bf16.msra.mxu1 %v2060_v37  ;;  %1018 = vst [vmem:[#allocation4 + $0x1c] sm:$0xf] %v1008_v24  ;;  %988 = vst [vmem:[#allocation4 + $0x24] sm:$0xf] %v980_v26  ;;  %v2072_v28 = vld [vmem:[#allocation4 + $0x8] ss:$12 sps:$4 sm:$0xff]  }
 0x14c   : > { %1926 = vmatprep.subr.bf16.mxu1 %v2063_v9  ;;  %v1011_v27 = vsel %vm2337_vm6, %v1009_v25, %v1010_v23  ;;  %v2068_v31 = vld [vmem:[#allocation4] ss:$12 sps:$4 sm:$0xff]   ;;  %1932 = vmatprep.mubr.bf16.mxu1 %v2072_v28  ;;  %v2083_v37 = vld [vmem:[%s2523_s6 + $0x30] sm:$0xff]  }
 0x14d   : > { %1851 = vmatpush3.bf16.msra.mxu0 %v2061_v39  ;;  %1019 = vst [vmem:[#allocation4 + $0x28] sm:$0xf] %v1011_v27  ;;  %v2073_v29 = vld [vmem:[#allocation4 + $0x20] ss:$12 sps:$4 sm:$0xff]  }
 0x14e   : > { %1852 = vmatprep.subr.bf16.mxu0 %v2062_v40  ;;  %v2070_v32 = vld [vmem:[#allocation4 + $0x4] ss:$12 sps:$4 sm:$0xff]  }
 0x14f   : > { %1927 = vmatpush3.bf16.msra.mxu1 %v2063_v9  ;;  %1299 = vmatprep.mubr.bf16.mxu0 %v2070_v32 }
 0x150   : > { %1928 = vmatprep.subr.bf16.mxu1 %v2066_v43 }
 0x151   : > { %1853 = vmatpush3.bf16.msra.mxu0 %v2064_v42 }
 0x152   : > { %1854 = vmatprep.subr.bf16.mxu0 %v2065_v48  ;;  %v2076_v33 = vld [vmem:[#allocation4 + $0x18] ss:$12 sps:$4 sm:$0xff]  }
 0x153   : > { %1929 = vmatpush3.bf16.msra.mxu1 %v2066_v43 }
 0x154   : > { %1930 = vmatprep.subr.bf16.mxu1 %v2071_v60  ;;  %v2074_v41 = vld [vmem:[#allocation4 + $0x1c] ss:$12 sps:$4 sm:$0xff]  }
 0x155   : > { %1855 = vmatpush3.bf16.msra.mxu0 %v2067_v56 }
 0x156   : > { %1936 = vmatprep.subr.bf16.mxu0 %v2077_v63 }
 0x157   : > { %1931 = vmatpush3.bf16.msra.mxu1 %v2071_v60 }
 0x158   : > { %1300 = vmatmul.mubr.bf16.vlgmr.msra.gmra.mrb[12].mxu0 %v2068_v31 }
 0x159   : > { %1937 = vmatpush3.bf16.msra.mxu0 %v2077_v63  ;;  %1307 = vmatprep.mubr.bf16.mxu0 %v2074_v41 }
 0x15a   : > { %1933 = vmatmul.mubr.bf16.vlgmr.msra.gmra.mrb[12].mxu1 %v2073_v29  ;;  %1938 = vmatprep.subr.bf16.mxu0 %v2078_v30 }
 0x15d   : > { %1939 = vmatpush3.bf16.msra.mxu0 %v2078_v30 }
 0x15e   : > { %1940 = vmatprep.subr.bf16.mxu0 %v2079_v46 }
 0x160   : > { %1308 = vmatmul.mubr.bf16.gmra.mrb[16].mxu0 %v2076_v33 }
 0x161   : > { %1941 = vmatpush3.bf16.msra.mxu0 %v2079_v46 }
 0x162   : > { %1942 = vmatprep.subr.bf16.mxu0 %v2080_v34 }
 0x165   : > { %1943 = vmatpush3.bf16.msra.mxu0 %v2080_v34 }
 0x166   : > { %1944 = vmatprep.subr.bf16.mxu0 %v2081_v35 }
 0x169   : > { %1945 = vmatpush3.bf16.msra.mxu0 %v2081_v35 }
 0x16a   : > { %1946 = vmatprep.subr.bf16.mxu0 %v2082_v36 }
 0x16d   : > { %1947 = vmatpush3.bf16.msra.mxu0 %v2082_v36 }
 0x16e   : > { %1948 = vmatprep.subr.bf16.mxu0 %v2083_v37 }
 0x171   : > { %1949 = vmatpush3.bf16.msra.mxu0 %v2083_v37 }
 0x172   : > { %1950 = vmatprep.subr.bf16.mxu0 %v2084_v38 }
 0x175   : > { %1951 = vmatpush3.bf16.msra.mxu0 %v2084_v38 }
 0x22b   : > { %v1856_v40 = vpop.f32.mrb[12].mxu0 }
 0x22c   : > { %v1857_v43 = vpop.f32.mrb[13].mxu0 }
 0x22d   : > { %v1934_v39 = vpop.f32.mrb[12].mxu1  ;;  %v1858_v47 = vadd.f32 %v1857_v43, %v1856_v40  ;;  %v1859_v48 = vpop.f32.mrb[14].mxu0 }
 0x22e   : > { %v1350_v9 = vpop.f32.mrb[13].mxu1  ;;  %v1860_v49 = vpop.f32.mrb[15].mxu0 }
 0x22f   : > { %v1935_v42 = vpop.f32.mrb[14].mxu1  ;;  %v1861_v50 = vadd.f32 %v1860_v49, %v1859_v48  ;;  %v1302_v51 = vadd.f32 %v1858_v47, %v1718_v44 }
 0x230   : > { %v1353_v45 = vpop.f32.mrb[15].mxu1 }
 0x231   : > { %v1351_v52 = vadd.f32 %v1350_v9, %v1302_v51  ;;  %v1305_v54 = vadd.f32 %v1861_v50, %v1718_v44 }
 0x233   : > { %v1365_v55 = vmax.f32 %v1351_v52, 0.0  ;;  %v1354_v56 = vadd.f32 %v1353_v45, %v1305_v54  ;;  %v1862_v58 = vpop.f32.mrb[16].mxu0 }
 0x234   : > { %v1863_v59 = vpop.f32.mrb[17].mxu0 }
 0x235   : > { %v1373_v60 = vadd.f32 %v1369_v53, %v1365_v55  ;;  %v1366_v61 = vmax.f32 %v1354_v56, 0.0  ;;  %v1864_v62 = vadd.f32 %v1863_v59, %v1862_v58  ;;  %v1865_v63 = vpop.f32.mrb[18].mxu0 }
 0x236   : > { %v1866_v4 = vpop.f32.mrb[19].mxu0 }
 0x237   : > { %v1374_v5 = vadd.f32 %v1370_v57, %v1366_v61  ;;  %v1310_v6 = vadd.f32 %v1864_v62, %v1718_v44  ;;  %v1867_v7 = vadd.f32 %v1866_v4, %v1865_v63  ;;  %v1377_v10 = vmax.f32 %v1373_v60, 0.0 }
 0x239   : > { %v1378_v11 = vmax.f32 %v1374_v5, 0.0  ;;  %v1359_v0 = vadd.f32 %v1934_v39, %v1310_v6  ;;  %v1313_v12 = vadd.f32 %v1867_v7, %v1718_v44 }
 0x23b   : > { %v1367_v13 = vmax.f32 %v1359_v0, 0.0  ;;  %v1362_v14 = vadd.f32 %v1935_v42, %v1313_v12  ;;  %v1381_v15 = vpack.c.bf16 %v1378_v11, %v1377_v10 }
 0x23d   : > { %v1375_v16 = vadd.f32 %v1371_v8, %v1367_v13  ;;  %v1368_v17 = vmax.f32 %v1362_v14, 0.0  ;;  %1952 = vmatprep.mubr.bf16.mxu0 %v1381_v15 }
 0x23f   : > { %v1376_v18 = vadd.f32 %v1372_v1, %v1368_v17  ;;  %v1379_v19 = vmax.f32 %v1375_v16, 0.0 }
 0x241   : > { %v1380_v20 = vmax.f32 %v1376_v18, 0.0 }
 0x243   : > { %v1382_v21 = vpack.c.bf16 %v1380_v20, %v1379_v19 }
 0x245   : > { %1953 = vmatmul.mubr.bf16.vlgmr.msra.gmra.mrb[20].mxu0 %v1382_v21 }
 0x318   : > { %v1954_v22 = vpop.f32.mrb[20].mxu0 }
 0x319   : > { %v1497_v23 = vadd.f32 %v1954_v22, %v1749_v2  ;;  %v1488_v24 = vpop.f32.mrb[21].mxu0 }
 0x31a   : > { %v1489_v25 = vadd.f32 %v1749_v2, %v1488_v24  ;;  %v1955_v3 = vpop.f32.mrb[22].mxu0 }
 0x31b   : > { %v1500_v26 = vadd.f32 %v1955_v3, %v1749_v2  ;;  %v1491_v27 = vpop.f32.mrb[23].mxu0  ;;  %v1505_v29 = vmax.f32 %v1497_v23, 0.0 }
 0x31c   : > { %v1492_v28 = vadd.f32 %v1749_v2, %v1491_v27  ;;  %v1503_v31 = vmax.f32 %v1489_v25, 0.0 }
 0x31d   : > { %v1506_v30 = vmax.f32 %v1500_v26, 0.0 }
 0x31e   : > { %v1504_v32 = vmax.f32 %v1492_v28, 0.0 }
 0x31f   : > { %v1791_v41 = vpack.c.bf16 %v1506_v30, %v1505_v29 }
 0x320   : > { %v1786_v33 = vpack.c.bf16 %v1504_v32, %v1503_v31 }
 0x321   : > { %1794 = vst [vmem:[%s2218_s22 + $0x8] sm:$0xff] %v1791_v41  }
 0x322   : > { %1787 = vst [vmem:[%s2218_s22] sm:$0xff] %v1786_v33  }
 0x323 PF: > { %s18_s9 = sadd.s32 1, %s2127_s9   ;;  %s2530_s27 = smov %s2119_s29 }
 0x324   : > { %p15_p11 = scmp.ge.s32.totalorder %s18_s9, 6   ;;  %s2531_s28 = smov %s2123_s30 }
 0x325   : > { %s2532_s29 = smov %s2535_s10  ;;  %s2533_s30 = smov %s2539_s11 }
 0x326   :  { %17 = sbr.rel (!%p15_p11) target bundleno = 3 (0x3), region = 97 }

</bundles_post_ra>
